<compile_context>
chip_gen: v7x
topology: tpu7x:2x2x1
jax: 0.10.0
libtpu: 0.0.40
codegen_flags: <defaults>
</compile_context>

<pallas_src>
import functools

import jax
import jax.numpy as jnp
from jax.experimental import pallas as pl
from jax.experimental.pallas import tpu as pltpu


def _dwsep_kernel(*refs, h, w, cin, taps_d, taps_h, taps_w):
    """One grid step = one (batch n, output depth plane d).

    refs layout (positional):
      refs[0 .. taps_d-1]: (1, 1, Hp, Wp, Cin)   depth-shifted padded input planes (kd = 0..KD-1)
      refs[taps_d]       : (KD*KH*KW, 1, Cin)    depthwise tap weights  (VMEM-resident)
      refs[taps_d + 1]   : (Cin, Cout)           pointwise weights      (VMEM-resident)
      refs[taps_d + 2]   : (1, 1, H*W, Cout)     output plane
    """
    x_refs = refs[:taps_d]
    dwt_ref = refs[taps_d]
    pw_ref = refs[taps_d + 1]
    o_ref = refs[taps_d + 2]

    # Depthwise kxkxk: KD*KH*KW shifted VPU FMAs into an f32 accumulator (no matmuls here,
    # so MXU FLOPs are not inflated 27x by folding the taps into the pointwise weights).
    dw_acc = jnp.zeros((h, w, cin), jnp.float32)
    for kd in range(taps_d):
        for kh in range(taps_h):
            for kw in range(taps_w):
                tap = (kd * taps_h + kh) * taps_w + kw
                win = x_refs[kd][0, 0, kh:kh + h, kw:kw + w, :]   # (H, W, Cin) shifted window
                dw_acc = dw_acc + win * dwt_ref[tap]              # (1, Cin) broadcast over (H, W)

    # Pointwise 1x1x1: one MXU matmul per plane.
    lhs = dw_acc.reshape(h * w, cin).astype(pw_ref.dtype)
    out = jnp.dot(lhs, pw_ref[...], preferred_element_type=jnp.float32)
    o_ref[0, 0] = out.astype(o_ref.dtype)


def depthwise_separable_conv(x_ncdhw, w_dw, w_pw, *, compute_dtype=jnp.float32):
    """Fused DepthwiseSeparableConv forward (stride=1, padding=k//2, no bias).

    x_ncdhw: (N, Cin, D, H, W)
    w_dw   : (Cin, 1, KD, KH, KW)   PyTorch depthwise Conv3d weight (groups=Cin)
    w_pw   : (Cout, Cin, 1, 1, 1)   PyTorch pointwise Conv3d weight
    returns: (N, Cout, D, H, W)
    """
    N, Cin, D, H, W = x_ncdhw.shape
    Cout = w_pw.shape[0]
    KD, KH, KW = w_dw.shape[2:]
    pd, ph, pw_halo = KD // 2, KH // 2, KW // 2

    # NCDHW -> NDHWC (channels on lanes) and pad ALL of D/H/W halos in the single
    # materialized copy (the D halo is ~free and removes every in-kernel boundary case).
    x = jnp.transpose(x_ncdhw, (0, 2, 3, 4, 1)).astype(compute_dtype)
    x = jnp.pad(x, ((0, 0), (pd, pd), (ph, ph), (pw_halo, pw_halo), (0, 0)))
    Dp, Hp, Wp = D + 2 * pd, H + 2 * ph, W + 2 * pw_halo

    # Depthwise tap weights: dwt[(kd*KH+kh)*KW+kw, 0, ci] = w_dw[ci, 0, kd, kh, kw]
    taps = KD * KH * KW
    dwt = jnp.transpose(w_dw[:, 0], (1, 2, 3, 0)).reshape(taps, 1, Cin).astype(compute_dtype)
    # Pointwise weights as the MXU RHS: (Cin, Cout).
    pw_mat = jnp.transpose(w_pw[:, :, 0, 0, 0], (1, 0)).astype(compute_dtype)

    def x_spec(kd):
        # Block size 1 along padded-D => block index == plane index; output plane d needs
        # padded planes d+0 .. d+KD-1.
        return pl.BlockSpec((1, 1, Hp, Wp, Cin),
                            lambda n, d, _kd=kd: (n, d + _kd, 0, 0, 0))

    kernel = functools.partial(_dwsep_kernel, h=H, w=W, cin=Cin,
                               taps_d=KD, taps_h=KH, taps_w=KW)

    # TODO(synk): for very large planes (Hp*Wp*Cin beyond a few MiB) re-derive the tile
    # budget per generation (v7x: 64 MiB physical / 32 MiB scoped VMEM) by strip-mining H
    # and/or setting pltpu.CompilerParams(vmem_limit_bytes=...).
    out = pl.pallas_call(
        kernel,
        out_shape=jax.ShapeDtypeStruct((N, D, H * W, Cout), x_ncdhw.dtype),
        grid=(N, D),
        in_specs=(
            [x_spec(kd) for kd in range(KD)] + [
                pl.BlockSpec((taps, 1, Cin), lambda n, d: (0, 0, 0)),
                pl.BlockSpec((Cin, Cout), lambda n, d: (0, 0)),
            ]
        ),
        out_specs=pl.BlockSpec((1, 1, H * W, Cout), lambda n, d: (n, d, 0, 0)),
        compiler_params=pltpu.CompilerParams(
            dimension_semantics=("parallel", "parallel")),
    )(*([x] * KD), dwt, pw_mat)

    # (N, D, H*W, Cout) -> (N, D, H, W, Cout) -> NCDHW
    out = out.reshape(N, D, H, W, Cout)
    return jnp.transpose(out, (0, 4, 1, 2, 3))


def _reference(x, w_dw, w_pw):
    dn = ("NCDHW", "OIDHW", "NCDHW")
    Cin = x.shape[1]
    KD, KH, KW = w_dw.shape[2:]
    dw = jax.lax.conv_general_dilated(
        x, w_dw, window_strides=(1, 1, 1),
        padding=[(KD // 2, KD // 2), (KH // 2, KH // 2), (KW // 2, KW // 2)],
        dimension_numbers=dn, feature_group_count=Cin)
    return jax.lax.conv_general_dilated(
        dw, w_pw, window_strides=(1, 1, 1), padding="VALID",
        dimension_numbers=dn)


if __name__ == "__main__":
    key = jax.random.PRNGKey(0)
    k_x, k_dw, k_pw = jax.random.split(key, 3)

    N, Cin, Cout = 2, 4, 8
    D = H = W = 8
    K = 3

    x = jax.random.normal(k_x, (N, Cin, D, H, W), jnp.float32)
    # Same parameter shapes as the PyTorch module (depthwise + pointwise Conv3d, no bias).
    w_dw = jax.random.normal(k_dw, (Cin, 1, K, K, K), jnp.float32) * 0.2
    w_pw = jax.random.normal(k_pw, (Cout, Cin, 1, 1, 1), jnp.float32) * 0.2

    out = jax.block_until_ready(depthwise_separable_conv(x, w_dw, w_pw))
    ref = jax.block_until_ready(_reference(x, w_dw, w_pw))

    assert out.shape == (N, Cout, D, H, W), out.shape
    max_err = float(jnp.max(jnp.abs(out - ref)))
    assert jnp.allclose(out, ref, atol=1e-4, rtol=1e-4), max_err

    print("KERNEL_OK")
</pallas_src>

<mosaic_0001>
module attributes {stable_mosaic.version = 11 : i64} {
  func.func @_dwsep_kernel(%arg0: i32, %arg1: i32, %arg2: memref<1x1x10x10x4xf32, #tpu.memory_space<vmem>>, %arg3: memref<1x1x10x10x4xf32, #tpu.memory_space<vmem>>, %arg4: memref<1x1x10x10x4xf32, #tpu.memory_space<vmem>>, %arg5: memref<27x1x4xf32, #tpu.memory_space<vmem>>, %arg6: memref<4x8xf32, #tpu.memory_space<vmem>>, %arg7: memref<1x1x64x8xf32, #tpu.memory_space<vmem>>) attributes {dimension_semantics = [#tpu.dimension_semantics<parallel>, #tpu.dimension_semantics<parallel>], iteration_bounds = array<i64: 2, 8>, scalar_prefetch = 0 : i64, scratch_operands = 0 : i64, tpu.core_type = #tpu.core_type<tc>, window_params = [{transform_indices = @transform_0, window_bounds = array<i64: 1, 1, 10, 10, 4>}, {transform_indices = @transform_1, window_bounds = array<i64: 1, 1, 10, 10, 4>}, {transform_indices = @transform_2, window_bounds = array<i64: 1, 1, 10, 10, 4>}, {pipeline_mode = #tpu.pipeline_mode<synchronous>, transform_indices = @transform_3, window_bounds = array<i64: 27, 1, 4>}, {pipeline_mode = #tpu.pipeline_mode<synchronous>, transform_indices = @transform_4, window_bounds = array<i64: 4, 8>}, {transform_indices = @transform_5, window_bounds = array<i64: 1, 1, 64, 8>}]} {
    %cst = arith.constant 0.000000e+00 : f32
    %0 = vector.broadcast %cst : f32 to vector<8x8x4xf32>
    %c0 = arith.constant 0 : index
    %c0_0 = arith.constant 0 : index
    %c0_1 = arith.constant 0 : index
    %c0_2 = arith.constant 0 : index
    %c0_3 = arith.constant 0 : index
    %1 = vector.load %arg2[%c0, %c0_0, %c0_1, %c0_2, %c0_3] : memref<1x1x10x10x4xf32, #tpu.memory_space<vmem>>, vector<1x1x8x8x4xf32>
    %2 = vector.shape_cast %1 : vector<1x1x8x8x4xf32> to vector<8x8x4xf32>
    %c0_4 = arith.constant 0 : index
    %c0_5 = arith.constant 0 : index
    %c0_6 = arith.constant 0 : index
    %3 = vector.load %arg5[%c0_4, %c0_5, %c0_6] : memref<27x1x4xf32, #tpu.memory_space<vmem>>, vector<1x1x4xf32>
    %4 = vector.shape_cast %3 : vector<1x1x4xf32> to vector<1x4xf32>
    %5 = vector.shape_cast %4 : vector<1x4xf32> to vector<1x1x4xf32>
    %6 = vector.broadcast %5 : vector<1x1x4xf32> to vector<8x8x4xf32>
    %7 = arith.mulf %2, %6 : vector<8x8x4xf32>
    %8 = arith.addf %0, %7 : vector<8x8x4xf32>
    %c0_7 = arith.constant 0 : index
    %c0_8 = arith.constant 0 : index
    %c0_9 = arith.constant 0 : index
    %c1 = arith.constant 1 : index
    %c0_10 = arith.constant 0 : index
    %9 = vector.load %arg2[%c0_7, %c0_8, %c0_9, %c1, %c0_10] : memref<1x1x10x10x4xf32, #tpu.memory_space<vmem>>, vector<1x1x8x8x4xf32>
    %10 = vector.shape_cast %9 : vector<1x1x8x8x4xf32> to vector<8x8x4xf32>
    %c1_11 = arith.constant 1 : index
    %c0_12 = arith.constant 0 : index
    %c0_13 = arith.constant 0 : index
    %11 = vector.load %arg5[%c1_11, %c0_12, %c0_13] : memref<27x1x4xf32, #tpu.memory_space<vmem>>, vector<1x1x4xf32>
    %12 = vector.shape_cast %11 : vector<1x1x4xf32> to vector<1x4xf32>
    %13 = vector.shape_cast %12 : vector<1x4xf32> to vector<1x1x4xf32>
    %14 = vector.broadcast %13 : vector<1x1x4xf32> to vector<8x8x4xf32>
    %15 = arith.mulf %10, %14 : vector<8x8x4xf32>
    %16 = arith.addf %8, %15 : vector<8x8x4xf32>
    %c0_14 = arith.constant 0 : index
    %c0_15 = arith.constant 0 : index
    %c0_16 = arith.constant 0 : index
    %c2 = arith.constant 2 : index
    %c0_17 = arith.constant 0 : index
    %17 = vector.load %arg2[%c0_14, %c0_15, %c0_16, %c2, %c0_17] : memref<1x1x10x10x4xf32, #tpu.memory_space<vmem>>, vector<1x1x8x8x4xf32>
    %18 = vector.shape_cast %17 : vector<1x1x8x8x4xf32> to vector<8x8x4xf32>
    %c2_18 = arith.constant 2 : index
    %c0_19 = arith.constant 0 : index
    %c0_20 = arith.constant 0 : index
    %19 = vector.load %arg5[%c2_18, %c0_19, %c0_20] : memref<27x1x4xf32, #tpu.memory_space<vmem>>, vector<1x1x4xf32>
    %20 = vector.shape_cast %19 : vector<1x1x4xf32> to vector<1x4xf32>
    %21 = vector.shape_cast %20 : vector<1x4xf32> to vector<1x1x4xf32>
    %22 = vector.broadcast %21 : vector<1x1x4xf32> to vector<8x8x4xf32>
    %23 = arith.mulf %18, %22 : vector<8x8x4xf32>
    %24 = arith.addf %16, %23 : vector<8x8x4xf32>
    %c0_21 = arith.constant 0 : index
    %c0_22 = arith.constant 0 : index
    %c1_23 = arith.constant 1 : index
    %c0_24 = arith.constant 0 : index
    %c0_25 = arith.constant 0 : index
    %25 = vector.load %arg2[%c0_21, %c0_22, %c1_23, %c0_24, %c0_25] : memref<1x1x10x10x4xf32, #tpu.memory_space<vmem>>, vector<1x1x8x8x4xf32>
    %26 = vector.shape_cast %25 : vector<1x1x8x8x4xf32> to vector<8x8x4xf32>
    %c3 = arith.constant 3 : index
    %c0_26 = arith.constant 0 : index
    %c0_27 = arith.constant 0 : index
    %27 = vector.load %arg5[%c3, %c0_26, %c0_27] : memref<27x1x4xf32, #tpu.memory_space<vmem>>, vector<1x1x4xf32>
    %28 = vector.shape_cast %27 : vector<1x1x4xf32> to vector<1x4xf32>
    %29 = vector.shape_cast %28 : vector<1x4xf32> to vector<1x1x4xf32>
    %30 = vector.broadcast %29 : vector<1x1x4xf32> to vector<8x8x4xf32>
    %31 = arith.mulf %26, %30 : vector<8x8x4xf32>
    %32 = arith.addf %24, %31 : vector<8x8x4xf32>
    %c0_28 = arith.constant 0 : index
    %c0_29 = arith.constant 0 : index
    %c1_30 = arith.constant 1 : index
    %c1_31 = arith.constant 1 : index
    %c0_32 = arith.constant 0 : index
    %33 = vector.load %arg2[%c0_28, %c0_29, %c1_30, %c1_31, %c0_32] : memref<1x1x10x10x4xf32, #tpu.memory_space<vmem>>, vector<1x1x8x8x4xf32>
    %34 = vector.shape_cast %33 : vector<1x1x8x8x4xf32> to vector<8x8x4xf32>
    %c4 = arith.constant 4 : index
    %c0_33 = arith.constant 0 : index
    %c0_34 = arith.constant 0 : index
    %35 = vector.load %arg5[%c4, %c0_33, %c0_34] : memref<27x1x4xf32, #tpu.memory_space<vmem>>, vector<1x1x4xf32>
    %36 = vector.shape_cast %35 : vector<1x1x4xf32> to vector<1x4xf32>
    %37 = vector.shape_cast %36 : vector<1x4xf32> to vector<1x1x4xf32>
    %38 = vector.broadcast %37 : vector<1x1x4xf32> to vector<8x8x4xf32>
    %39 = arith.mulf %34, %38 : vector<8x8x4xf32>
    %40 = arith.addf %32, %39 : vector<8x8x4xf32>
    %c0_35 = arith.constant 0 : index
    %c0_36 = arith.constant 0 : index
    %c1_37 = arith.constant 1 : index
    %c2_38 = arith.constant 2 : index
    %c0_39 = arith.constant 0 : index
    %41 = vector.load %arg2[%c0_35, %c0_36, %c1_37, %c2_38, %c0_39] : memref<1x1x10x10x4xf32, #tpu.memory_space<vmem>>, vector<1x1x8x8x4xf32>
    %42 = vector.shape_cast %41 : vector<1x1x8x8x4xf32> to vector<8x8x4xf32>
    %c5 = arith.constant 5 : index
    %c0_40 = arith.constant 0 : index
    %c0_41 = arith.constant 0 : index
    %43 = vector.load %arg5[%c5, %c0_40, %c0_41] : memref<27x1x4xf32, #tpu.memory_space<vmem>>, vector<1x1x4xf32>
    %44 = vector.shape_cast %43 : vector<1x1x4xf32> to vector<1x4xf32>
    %45 = vector.shape_cast %44 : vector<1x4xf32> to vector<1x1x4xf32>
    %46 = vector.broadcast %45 : vector<1x1x4xf32> to vector<8x8x4xf32>
    %47 = arith.mulf %42, %46 : vector<8x8x4xf32>
    %48 = arith.addf %40, %47 : vector<8x8x4xf32>
    %c0_42 = arith.constant 0 : index
    %c0_43 = arith.constant 0 : index
    %c2_44 = arith.constant 2 : index
    %c0_45 = arith.constant 0 : index
    %c0_46 = arith.constant 0 : index
    %49 = vector.load %arg2[%c0_42, %c0_43, %c2_44, %c0_45, %c0_46] : memref<1x1x10x10x4xf32, #tpu.memory_space<vmem>>, vector<1x1x8x8x4xf32>
    %50 = vector.shape_cast %49 : vector<1x1x8x8x4xf32> to vector<8x8x4xf32>
    %c6 = arith.constant 6 : index
    %c0_47 = arith.constant 0 : index
    %c0_48 = arith.constant 0 : index
    %51 = vector.load %arg5[%c6, %c0_47, %c0_48] : memref<27x1x4xf32, #tpu.memory_space<vmem>>, vector<1x1x4xf32>
    %52 = vector.shape_cast %51 : vector<1x1x4xf32> to vector<1x4xf32>
    %53 = vector.shape_cast %52 : vector<1x4xf32> to vector<1x1x4xf32>
    %54 = vector.broadcast %53 : vector<1x1x4xf32> to vector<8x8x4xf32>
    %55 = arith.mulf %50, %54 : vector<8x8x4xf32>
    %56 = arith.addf %48, %55 : vector<8x8x4xf32>
    %c0_49 = arith.constant 0 : index
    %c0_50 = arith.constant 0 : index
    %c2_51 = arith.constant 2 : index
    %c1_52 = arith.constant 1 : index
    %c0_53 = arith.constant 0 : index
    %57 = vector.load %arg2[%c0_49, %c0_50, %c2_51, %c1_52, %c0_53] : memref<1x1x10x10x4xf32, #tpu.memory_space<vmem>>, vector<1x1x8x8x4xf32>
    %58 = vector.shape_cast %57 : vector<1x1x8x8x4xf32> to vector<8x8x4xf32>
    %c7 = arith.constant 7 : index
    %c0_54 = arith.constant 0 : index
    %c0_55 = arith.constant 0 : index
    %59 = vector.load %arg5[%c7, %c0_54, %c0_55] : memref<27x1x4xf32, #tpu.memory_space<vmem>>, vector<1x1x4xf32>
    %60 = vector.shape_cast %59 : vector<1x1x4xf32> to vector<1x4xf32>
    %61 = vector.shape_cast %60 : vector<1x4xf32> to vector<1x1x4xf32>
    %62 = vector.broadcast %61 : vector<1x1x4xf32> to vector<8x8x4xf32>
    %63 = arith.mulf %58, %62 : vector<8x8x4xf32>
    %64 = arith.addf %56, %63 : vector<8x8x4xf32>
    %c0_56 = arith.constant 0 : index
    %c0_57 = arith.constant 0 : index
    %c2_58 = arith.constant 2 : index
    %c2_59 = arith.constant 2 : index
    %c0_60 = arith.constant 0 : index
    %65 = vector.load %arg2[%c0_56, %c0_57, %c2_58, %c2_59, %c0_60] : memref<1x1x10x10x4xf32, #tpu.memory_space<vmem>>, vector<1x1x8x8x4xf32>
    %66 = vector.shape_cast %65 : vector<1x1x8x8x4xf32> to vector<8x8x4xf32>
    %c8 = arith.constant 8 : index
    %c0_61 = arith.constant 0 : index
    %c0_62 = arith.constant 0 : index
    %67 = vector.load %arg5[%c8, %c0_61, %c0_62] : memref<27x1x4xf32, #tpu.memory_space<vmem>>, vector<1x1x4xf32>
    %68 = vector.shape_cast %67 : vector<1x1x4xf32> to vector<1x4xf32>
    %69 = vector.shape_cast %68 : vector<1x4xf32> to vector<1x1x4xf32>
    %70 = vector.broadcast %69 : vector<1x1x4xf32> to vector<8x8x4xf32>
    %71 = arith.mulf %66, %70 : vector<8x8x4xf32>
    %72 = arith.addf %64, %71 : vector<8x8x4xf32>
    %c0_63 = arith.constant 0 : index
    %c0_64 = arith.constant 0 : index
    %c0_65 = arith.constant 0 : index
    %c0_66 = arith.constant 0 : index
    %c0_67 = arith.constant 0 : index
    %73 = vector.load %arg3[%c0_63, %c0_64, %c0_65, %c0_66, %c0_67] : memref<1x1x10x10x4xf32, #tpu.memory_space<vmem>>, vector<1x1x8x8x4xf32>
    %74 = vector.shape_cast %73 : vector<1x1x8x8x4xf32> to vector<8x8x4xf32>
    %c9 = arith.constant 9 : index
    %c0_68 = arith.constant 0 : index
    %c0_69 = arith.constant 0 : index
    %75 = vector.load %arg5[%c9, %c0_68, %c0_69] : memref<27x1x4xf32, #tpu.memory_space<vmem>>, vector<1x1x4xf32>
    %76 = vector.shape_cast %75 : vector<1x1x4xf32> to vector<1x4xf32>
    %77 = vector.shape_cast %76 : vector<1x4xf32> to vector<1x1x4xf32>
    %78 = vector.broadcast %77 : vector<1x1x4xf32> to vector<8x8x4xf32>
    %79 = arith.mulf %74, %78 : vector<8x8x4xf32>
    %80 = arith.addf %72, %79 : vector<8x8x4xf32>
    %c0_70 = arith.constant 0 : index
    %c0_71 = arith.constant 0 : index
    %c0_72 = arith.constant 0 : index
    %c1_73 = arith.constant 1 : index
    %c0_74 = arith.constant 0 : index
    %81 = vector.load %arg3[%c0_70, %c0_71, %c0_72, %c1_73, %c0_74] : memref<1x1x10x10x4xf32, #tpu.memory_space<vmem>>, vector<1x1x8x8x4xf32>
    %82 = vector.shape_cast %81 : vector<1x1x8x8x4xf32> to vector<8x8x4xf32>
    %c10 = arith.constant 10 : index
    %c0_75 = arith.constant 0 : index
    %c0_76 = arith.constant 0 : index
    %83 = vector.load %arg5[%c10, %c0_75, %c0_76] : memref<27x1x4xf32, #tpu.memory_space<vmem>>, vector<1x1x4xf32>
    %84 = vector.shape_cast %83 : vector<1x1x4xf32> to vector<1x4xf32>
    %85 = vector.shape_cast %84 : vector<1x4xf32> to vector<1x1x4xf32>
    %86 = vector.broadcast %85 : vector<1x1x4xf32> to vector<8x8x4xf32>
    %87 = arith.mulf %82, %86 : vector<8x8x4xf32>
    %88 = arith.addf %80, %87 : vector<8x8x4xf32>
    %c0_77 = arith.constant 0 : index
    %c0_78 = arith.constant 0 : index
    %c0_79 = arith.constant 0 : index
    %c2_80 = arith.constant 2 : index
    %c0_81 = arith.constant 0 : index
    %89 = vector.load %arg3[%c0_77, %c0_78, %c0_79, %c2_80, %c0_81] : memref<1x1x10x10x4xf32, #tpu.memory_space<vmem>>, vector<1x1x8x8x4xf32>
    %90 = vector.shape_cast %89 : vector<1x1x8x8x4xf32> to vector<8x8x4xf32>
    %c11 = arith.constant 11 : index
    %c0_82 = arith.constant 0 : index
    %c0_83 = arith.constant 0 : index
    %91 = vector.load %arg5[%c11, %c0_82, %c0_83] : memref<27x1x4xf32, #tpu.memory_space<vmem>>, vector<1x1x4xf32>
    %92 = vector.shape_cast %91 : vector<1x1x4xf32> to vector<1x4xf32>
    %93 = vector.shape_cast %92 : vector<1x4xf32> to vector<1x1x4xf32>
    %94 = vector.broadcast %93 : vector<1x1x4xf32> to vector<8x8x4xf32>
    %95 = arith.mulf %90, %94 : vector<8x8x4xf32>
    %96 = arith.addf %88, %95 : vector<8x8x4xf32>
    %c0_84 = arith.constant 0 : index
    %c0_85 = arith.constant 0 : index
    %c1_86 = arith.constant 1 : index
    %c0_87 = arith.constant 0 : index
    %c0_88 = arith.constant 0 : index
    %97 = vector.load %arg3[%c0_84, %c0_85, %c1_86, %c0_87, %c0_88] : memref<1x1x10x10x4xf32, #tpu.memory_space<vmem>>, vector<1x1x8x8x4xf32>
    %98 = vector.shape_cast %97 : vector<1x1x8x8x4xf32> to vector<8x8x4xf32>
    %c12 = arith.constant 12 : index
    %c0_89 = arith.constant 0 : index
    %c0_90 = arith.constant 0 : index
    %99 = vector.load %arg5[%c12, %c0_89, %c0_90] : memref<27x1x4xf32, #tpu.memory_space<vmem>>, vector<1x1x4xf32>
    %100 = vector.shape_cast %99 : vector<1x1x4xf32> to vector<1x4xf32>
    %101 = vector.shape_cast %100 : vector<1x4xf32> to vector<1x1x4xf32>
    %102 = vector.broadcast %101 : vector<1x1x4xf32> to vector<8x8x4xf32>
    %103 = arith.mulf %98, %102 : vector<8x8x4xf32>
    %104 = arith.addf %96, %103 : vector<8x8x4xf32>
    %c0_91 = arith.constant 0 : index
    %c0_92 = arith.constant 0 : index
    %c1_93 = arith.constant 1 : index
    %c1_94 = arith.constant 1 : index
    %c0_95 = arith.constant 0 : index
    %105 = vector.load %arg3[%c0_91, %c0_92, %c1_93, %c1_94, %c0_95] : memref<1x1x10x10x4xf32, #tpu.memory_space<vmem>>, vector<1x1x8x8x4xf32>
    %106 = vector.shape_cast %105 : vector<1x1x8x8x4xf32> to vector<8x8x4xf32>
    %c13 = arith.constant 13 : index
    %c0_96 = arith.constant 0 : index
    %c0_97 = arith.constant 0 : index
    %107 = vector.load %arg5[%c13, %c0_96, %c0_97] : memref<27x1x4xf32, #tpu.memory_space<vmem>>, vector<1x1x4xf32>
    %108 = vector.shape_cast %107 : vector<1x1x4xf32> to vector<1x4xf32>
    %109 = vector.shape_cast %108 : vector<1x4xf32> to vector<1x1x4xf32>
    %110 = vector.broadcast %109 : vector<1x1x4xf32> to vector<8x8x4xf32>
    %111 = arith.mulf %106, %110 : vector<8x8x4xf32>
    %112 = arith.addf %104, %111 : vector<8x8x4xf32>
    %c0_98 = arith.constant 0 : index
    %c0_99 = arith.constant 0 : index
    %c1_100 = arith.constant 1 : index
    %c2_101 = arith.constant 2 : index
    %c0_102 = arith.constant 0 : index
    %113 = vector.load %arg3[%c0_98, %c0_99, %c1_100, %c2_101, %c0_102] : memref<1x1x10x10x4xf32, #tpu.memory_space<vmem>>, vector<1x1x8x8x4xf32>
    %114 = vector.shape_cast %113 : vector<1x1x8x8x4xf32> to vector<8x8x4xf32>
    %c14 = arith.constant 14 : index
    %c0_103 = arith.constant 0 : index
    %c0_104 = arith.constant 0 : index
    %115 = vector.load %arg5[%c14, %c0_103, %c0_104] : memref<27x1x4xf32, #tpu.memory_space<vmem>>, vector<1x1x4xf32>
    %116 = vector.shape_cast %115 : vector<1x1x4xf32> to vector<1x4xf32>
    %117 = vector.shape_cast %116 : vector<1x4xf32> to vector<1x1x4xf32>
    %118 = vector.broadcast %117 : vector<1x1x4xf32> to vector<8x8x4xf32>
    %119 = arith.mulf %114, %118 : vector<8x8x4xf32>
    %120 = arith.addf %112, %119 : vector<8x8x4xf32>
    %c0_105 = arith.constant 0 : index
    %c0_106 = arith.constant 0 : index
    %c2_107 = arith.constant 2 : index
    %c0_108 = arith.constant 0 : index
    %c0_109 = arith.constant 0 : index
    %121 = vector.load %arg3[%c0_105, %c0_106, %c2_107, %c0_108, %c0_109] : memref<1x1x10x10x4xf32, #tpu.memory_space<vmem>>, vector<1x1x8x8x4xf32>
    %122 = vector.shape_cast %121 : vector<1x1x8x8x4xf32> to vector<8x8x4xf32>
    %c15 = arith.constant 15 : index
    %c0_110 = arith.constant 0 : index
    %c0_111 = arith.constant 0 : index
    %123 = vector.load %arg5[%c15, %c0_110, %c0_111] : memref<27x1x4xf32, #tpu.memory_space<vmem>>, vector<1x1x4xf32>
    %124 = vector.shape_cast %123 : vector<1x1x4xf32> to vector<1x4xf32>
    %125 = vector.shape_cast %124 : vector<1x4xf32> to vector<1x1x4xf32>
    %126 = vector.broadcast %125 : vector<1x1x4xf32> to vector<8x8x4xf32>
    %127 = arith.mulf %122, %126 : vector<8x8x4xf32>
    %128 = arith.addf %120, %127 : vector<8x8x4xf32>
    %c0_112 = arith.constant 0 : index
    %c0_113 = arith.constant 0 : index
    %c2_114 = arith.constant 2 : index
    %c1_115 = arith.constant 1 : index
    %c0_116 = arith.constant 0 : index
    %129 = vector.load %arg3[%c0_112, %c0_113, %c2_114, %c1_115, %c0_116] : memref<1x1x10x10x4xf32, #tpu.memory_space<vmem>>, vector<1x1x8x8x4xf32>
    %130 = vector.shape_cast %129 : vector<1x1x8x8x4xf32> to vector<8x8x4xf32>
    %c16 = arith.constant 16 : index
    %c0_117 = arith.constant 0 : index
    %c0_118 = arith.constant 0 : index
    %131 = vector.load %arg5[%c16, %c0_117, %c0_118] : memref<27x1x4xf32, #tpu.memory_space<vmem>>, vector<1x1x4xf32>
    %132 = vector.shape_cast %131 : vector<1x1x4xf32> to vector<1x4xf32>
    %133 = vector.shape_cast %132 : vector<1x4xf32> to vector<1x1x4xf32>
    %134 = vector.broadcast %133 : vector<1x1x4xf32> to vector<8x8x4xf32>
    %135 = arith.mulf %130, %134 : vector<8x8x4xf32>
    %136 = arith.addf %128, %135 : vector<8x8x4xf32>
    %c0_119 = arith.constant 0 : index
    %c0_120 = arith.constant 0 : index
    %c2_121 = arith.constant 2 : index
    %c2_122 = arith.constant 2 : index
    %c0_123 = arith.constant 0 : index
    %137 = vector.load %arg3[%c0_119, %c0_120, %c2_121, %c2_122, %c0_123] : memref<1x1x10x10x4xf32, #tpu.memory_space<vmem>>, vector<1x1x8x8x4xf32>
    %138 = vector.shape_cast %137 : vector<1x1x8x8x4xf32> to vector<8x8x4xf32>
    %c17 = arith.constant 17 : index
    %c0_124 = arith.constant 0 : index
    %c0_125 = arith.constant 0 : index
    %139 = vector.load %arg5[%c17, %c0_124, %c0_125] : memref<27x1x4xf32, #tpu.memory_space<vmem>>, vector<1x1x4xf32>
    %140 = vector.shape_cast %139 : vector<1x1x4xf32> to vector<1x4xf32>
    %141 = vector.shape_cast %140 : vector<1x4xf32> to vector<1x1x4xf32>
    %142 = vector.broadcast %141 : vector<1x1x4xf32> to vector<8x8x4xf32>
    %143 = arith.mulf %138, %142 : vector<8x8x4xf32>
    %144 = arith.addf %136, %143 : vector<8x8x4xf32>
    %c0_126 = arith.constant 0 : index
    %c0_127 = arith.constant 0 : index
    %c0_128 = arith.constant 0 : index
    %c0_129 = arith.constant 0 : index
    %c0_130 = arith.constant 0 : index
    %145 = vector.load %arg4[%c0_126, %c0_127, %c0_128, %c0_129, %c0_130] : memref<1x1x10x10x4xf32, #tpu.memory_space<vmem>>, vector<1x1x8x8x4xf32>
    %146 = vector.shape_cast %145 : vector<1x1x8x8x4xf32> to vector<8x8x4xf32>
    %c18 = arith.constant 18 : index
    %c0_131 = arith.constant 0 : index
    %c0_132 = arith.constant 0 : index
    %147 = vector.load %arg5[%c18, %c0_131, %c0_132] : memref<27x1x4xf32, #tpu.memory_space<vmem>>, vector<1x1x4xf32>
    %148 = vector.shape_cast %147 : vector<1x1x4xf32> to vector<1x4xf32>
    %149 = vector.shape_cast %148 : vector<1x4xf32> to vector<1x1x4xf32>
    %150 = vector.broadcast %149 : vector<1x1x4xf32> to vector<8x8x4xf32>
    %151 = arith.mulf %146, %150 : vector<8x8x4xf32>
    %152 = arith.addf %144, %151 : vector<8x8x4xf32>
    %c0_133 = arith.constant 0 : index
    %c0_134 = arith.constant 0 : index
    %c0_135 = arith.constant 0 : index
    %c1_136 = arith.constant 1 : index
    %c0_137 = arith.constant 0 : index
    %153 = vector.load %arg4[%c0_133, %c0_134, %c0_135, %c1_136, %c0_137] : memref<1x1x10x10x4xf32, #tpu.memory_space<vmem>>, vector<1x1x8x8x4xf32>
    %154 = vector.shape_cast %153 : vector<1x1x8x8x4xf32> to vector<8x8x4xf32>
    %c19 = arith.constant 19 : index
    %c0_138 = arith.constant 0 : index
    %c0_139 = arith.constant 0 : index
    %155 = vector.load %arg5[%c19, %c0_138, %c0_139] : memref<27x1x4xf32, #tpu.memory_space<vmem>>, vector<1x1x4xf32>
    %156 = vector.shape_cast %155 : vector<1x1x4xf32> to vector<1x4xf32>
    %157 = vector.shape_cast %156 : vector<1x4xf32> to vector<1x1x4xf32>
    %158 = vector.broadcast %157 : vector<1x1x4xf32> to vector<8x8x4xf32>
    %159 = arith.mulf %154, %158 : vector<8x8x4xf32>
    %160 = arith.addf %152, %159 : vector<8x8x4xf32>
    %c0_140 = arith.constant 0 : index
    %c0_141 = arith.constant 0 : index
    %c0_142 = arith.constant 0 : index
    %c2_143 = arith.constant 2 : index
    %c0_144 = arith.constant 0 : index
    %161 = vector.load %arg4[%c0_140, %c0_141, %c0_142, %c2_143, %c0_144] : memref<1x1x10x10x4xf32, #tpu.memory_space<vmem>>, vector<1x1x8x8x4xf32>
    %162 = vector.shape_cast %161 : vector<1x1x8x8x4xf32> to vector<8x8x4xf32>
    %c20 = arith.constant 20 : index
    %c0_145 = arith.constant 0 : index
    %c0_146 = arith.constant 0 : index
    %163 = vector.load %arg5[%c20, %c0_145, %c0_146] : memref<27x1x4xf32, #tpu.memory_space<vmem>>, vector<1x1x4xf32>
    %164 = vector.shape_cast %163 : vector<1x1x4xf32> to vector<1x4xf32>
    %165 = vector.shape_cast %164 : vector<1x4xf32> to vector<1x1x4xf32>
    %166 = vector.broadcast %165 : vector<1x1x4xf32> to vector<8x8x4xf32>
    %167 = arith.mulf %162, %166 : vector<8x8x4xf32>
    %168 = arith.addf %160, %167 : vector<8x8x4xf32>
    %c0_147 = arith.constant 0 : index
    %c0_148 = arith.constant 0 : index
    %c1_149 = arith.constant 1 : index
    %c0_150 = arith.constant 0 : index
    %c0_151 = arith.constant 0 : index
    %169 = vector.load %arg4[%c0_147, %c0_148, %c1_149, %c0_150, %c0_151] : memref<1x1x10x10x4xf32, #tpu.memory_space<vmem>>, vector<1x1x8x8x4xf32>
    %170 = vector.shape_cast %169 : vector<1x1x8x8x4xf32> to vector<8x8x4xf32>
    %c21 = arith.constant 21 : index
    %c0_152 = arith.constant 0 : index
    %c0_153 = arith.constant 0 : index
    %171 = vector.load %arg5[%c21, %c0_152, %c0_153] : memref<27x1x4xf32, #tpu.memory_space<vmem>>, vector<1x1x4xf32>
    %172 = vector.shape_cast %171 : vector<1x1x4xf32> to vector<1x4xf32>
    %173 = vector.shape_cast %172 : vector<1x4xf32> to vector<1x1x4xf32>
    %174 = vector.broadcast %173 : vector<1x1x4xf32> to vector<8x8x4xf32>
    %175 = arith.mulf %170, %174 : vector<8x8x4xf32>
    %176 = arith.addf %168, %175 : vector<8x8x4xf32>
    %c0_154 = arith.constant 0 : index
    %c0_155 = arith.constant 0 : index
    %c1_156 = arith.constant 1 : index
    %c1_157 = arith.constant 1 : index
    %c0_158 = arith.constant 0 : index
    %177 = vector.load %arg4[%c0_154, %c0_155, %c1_156, %c1_157, %c0_158] : memref<1x1x10x10x4xf32, #tpu.memory_space<vmem>>, vector<1x1x8x8x4xf32>
    %178 = vector.shape_cast %177 : vector<1x1x8x8x4xf32> to vector<8x8x4xf32>
    %c22 = arith.constant 22 : index
    %c0_159 = arith.constant 0 : index
    %c0_160 = arith.constant 0 : index
    %179 = vector.load %arg5[%c22, %c0_159, %c0_160] : memref<27x1x4xf32, #tpu.memory_space<vmem>>, vector<1x1x4xf32>
    %180 = vector.shape_cast %179 : vector<1x1x4xf32> to vector<1x4xf32>
    %181 = vector.shape_cast %180 : vector<1x4xf32> to vector<1x1x4xf32>
    %182 = vector.broadcast %181 : vector<1x1x4xf32> to vector<8x8x4xf32>
    %183 = arith.mulf %178, %182 : vector<8x8x4xf32>
    %184 = arith.addf %176, %183 : vector<8x8x4xf32>
    %c0_161 = arith.constant 0 : index
    %c0_162 = arith.constant 0 : index
    %c1_163 = arith.constant 1 : index
    %c2_164 = arith.constant 2 : index
    %c0_165 = arith.constant 0 : index
    %185 = vector.load %arg4[%c0_161, %c0_162, %c1_163, %c2_164, %c0_165] : memref<1x1x10x10x4xf32, #tpu.memory_space<vmem>>, vector<1x1x8x8x4xf32>
    %186 = vector.shape_cast %185 : vector<1x1x8x8x4xf32> to vector<8x8x4xf32>
    %c23 = arith.constant 23 : index
    %c0_166 = arith.constant 0 : index
    %c0_167 = arith.constant 0 : index
    %187 = vector.load %arg5[%c23, %c0_166, %c0_167] : memref<27x1x4xf32, #tpu.memory_space<vmem>>, vector<1x1x4xf32>
    %188 = vector.shape_cast %187 : vector<1x1x4xf32> to vector<1x4xf32>
    %189 = vector.shape_cast %188 : vector<1x4xf32> to vector<1x1x4xf32>
    %190 = vector.broadcast %189 : vector<1x1x4xf32> to vector<8x8x4xf32>
    %191 = arith.mulf %186, %190 : vector<8x8x4xf32>
    %192 = arith.addf %184, %191 : vector<8x8x4xf32>
    %c0_168 = arith.constant 0 : index
    %c0_169 = arith.constant 0 : index
    %c2_170 = arith.constant 2 : index
    %c0_171 = arith.constant 0 : index
    %c0_172 = arith.constant 0 : index
    %193 = vector.load %arg4[%c0_168, %c0_169, %c2_170, %c0_171, %c0_172] : memref<1x1x10x10x4xf32, #tpu.memory_space<vmem>>, vector<1x1x8x8x4xf32>
    %194 = vector.shape_cast %193 : vector<1x1x8x8x4xf32> to vector<8x8x4xf32>
    %c24 = arith.constant 24 : index
    %c0_173 = arith.constant 0 : index
    %c0_174 = arith.constant 0 : index
    %195 = vector.load %arg5[%c24, %c0_173, %c0_174] : memref<27x1x4xf32, #tpu.memory_space<vmem>>, vector<1x1x4xf32>
    %196 = vector.shape_cast %195 : vector<1x1x4xf32> to vector<1x4xf32>
    %197 = vector.shape_cast %196 : vector<1x4xf32> to vector<1x1x4xf32>
    %198 = vector.broadcast %197 : vector<1x1x4xf32> to vector<8x8x4xf32>
    %199 = arith.mulf %194, %198 : vector<8x8x4xf32>
    %200 = arith.addf %192, %199 : vector<8x8x4xf32>
    %c0_175 = arith.constant 0 : index
    %c0_176 = arith.constant 0 : index
    %c2_177 = arith.constant 2 : index
    %c1_178 = arith.constant 1 : index
    %c0_179 = arith.constant 0 : index
    %201 = vector.load %arg4[%c0_175, %c0_176, %c2_177, %c1_178, %c0_179] : memref<1x1x10x10x4xf32, #tpu.memory_space<vmem>>, vector<1x1x8x8x4xf32>
    %202 = vector.shape_cast %201 : vector<1x1x8x8x4xf32> to vector<8x8x4xf32>
    %c25 = arith.constant 25 : index
    %c0_180 = arith.constant 0 : index
    %c0_181 = arith.constant 0 : index
    %203 = vector.load %arg5[%c25, %c0_180, %c0_181] : memref<27x1x4xf32, #tpu.memory_space<vmem>>, vector<1x1x4xf32>
    %204 = vector.shape_cast %203 : vector<1x1x4xf32> to vector<1x4xf32>
    %205 = vector.shape_cast %204 : vector<1x4xf32> to vector<1x1x4xf32>
    %206 = vector.broadcast %205 : vector<1x1x4xf32> to vector<8x8x4xf32>
    %207 = arith.mulf %202, %206 : vector<8x8x4xf32>
    %208 = arith.addf %200, %207 : vector<8x8x4xf32>
    %c0_182 = arith.constant 0 : index
    %c0_183 = arith.constant 0 : index
    %c2_184 = arith.constant 2 : index
    %c2_185 = arith.constant 2 : index
    %c0_186 = arith.constant 0 : index
    %209 = vector.load %arg4[%c0_182, %c0_183, %c2_184, %c2_185, %c0_186] : memref<1x1x10x10x4xf32, #tpu.memory_space<vmem>>, vector<1x1x8x8x4xf32>
    %210 = vector.shape_cast %209 : vector<1x1x8x8x4xf32> to vector<8x8x4xf32>
    %c26 = arith.constant 26 : index
    %c0_187 = arith.constant 0 : index
    %c0_188 = arith.constant 0 : index
    %211 = vector.load %arg5[%c26, %c0_187, %c0_188] : memref<27x1x4xf32, #tpu.memory_space<vmem>>, vector<1x1x4xf32>
    %212 = vector.shape_cast %211 : vector<1x1x4xf32> to vector<1x4xf32>
    %213 = vector.shape_cast %212 : vector<1x4xf32> to vector<1x1x4xf32>
    %214 = vector.broadcast %213 : vector<1x1x4xf32> to vector<8x8x4xf32>
    %215 = arith.mulf %210, %214 : vector<8x8x4xf32>
    %216 = arith.addf %208, %215 : vector<8x8x4xf32>
    %217 = vector.shape_cast %216 : vector<8x8x4xf32> to vector<64x4xf32>
    %c0_189 = arith.constant 0 : index
    %c0_190 = arith.constant 0 : index
    %218 = vector.load %arg6[%c0_189, %c0_190] : memref<4x8xf32, #tpu.memory_space<vmem>>, vector<4x8xf32>
    %cst_191 = arith.constant dense<0.000000e+00> : vector<64x8xf32>
    %219 = tpu.matmul %217, %218, %cst_191 {dimension_numbers = #tpu.dot_dimension_numbers<[1], [0], [0], [1], [0, 0, 1, 1], [], []>} : vector<64x4xf32>, vector<4x8xf32>, vector<64x8xf32> -> vector<64x8xf32>
    %c0_192 = arith.constant 0 : index
    %c0_193 = arith.constant 0 : index
    %c0_194 = arith.constant 0 : index
    %c0_195 = arith.constant 0 : index
    %220 = vector.load %arg7[%c0_192, %c0_193, %c0_194, %c0_195] : memref<1x1x64x8xf32, #tpu.memory_space<vmem>>, vector<1x1x64x8xf32>
    %221 = vector.shape_cast %220 : vector<1x1x64x8xf32> to vector<64x8xf32>
    %222 = vector.shape_cast %219 : vector<64x8xf32> to vector<1x1x64x8xf32>
    tpu.vector_store %arg7[%c0_192, %c0_193, %c0_194, %c0_195], %222 {strides = array<i32>} : memref<1x1x64x8xf32, #tpu.memory_space<vmem>>, vector<1x1x64x8xf32>,
    return
  }
  func.func @transform_0(%arg0: i32, %arg1: i32) -> (i32, i32, i32, i32, i32) {
    %c0_i32 = arith.constant 0 : i32
    %0 = arith.addi %arg1, %c0_i32 : i32
    %c0_i32_0 = arith.constant 0 : i32
    %c0_i32_1 = arith.constant 0 : i32
    %c0_i32_2 = arith.constant 0 : i32
    %c0_i32_3 = arith.constant 0 : i32
    return %arg0, %0, %c0_i32_0, %c0_i32_1, %c0_i32_2 : i32, i32, i32, i32, i32
  }
  func.func @transform_1(%arg0: i32, %arg1: i32) -> (i32, i32, i32, i32, i32) {
    %c1_i32 = arith.constant 1 : i32
    %0 = arith.addi %arg1, %c1_i32 : i32
    %c0_i32 = arith.constant 0 : i32
    %c0_i32_0 = arith.constant 0 : i32
    %c0_i32_1 = arith.constant 0 : i32
    %c0_i32_2 = arith.constant 0 : i32
    return %arg0, %0, %c0_i32, %c0_i32_0, %c0_i32_1 : i32, i32, i32, i32, i32
  }
  func.func @transform_2(%arg0: i32, %arg1: i32) -> (i32, i32, i32, i32, i32) {
    %c2_i32 = arith.constant 2 : i32
    %0 = arith.addi %arg1, %c2_i32 : i32
    %c0_i32 = arith.constant 0 : i32
    %c0_i32_0 = arith.constant 0 : i32
    %c0_i32_1 = arith.constant 0 : i32
    %c0_i32_2 = arith.constant 0 : i32
    return %arg0, %0, %c0_i32, %c0_i32_0, %c0_i32_1 : i32, i32, i32, i32, i32
  }
  func.func @transform_3(%arg0: i32, %arg1: i32) -> (i32, i32, i32) {
    %c0_i32 = arith.constant 0 : i32
    %c0_i32_0 = arith.constant 0 : i32
    %c0_i32_1 = arith.constant 0 : i32
    %c0_i32_2 = arith.constant 0 : i32
    return %c0_i32, %c0_i32_0, %c0_i32_1 : i32, i32, i32
  }
  func.func @transform_4(%arg0: i32, %arg1: i32) -> (i32, i32) {
    %c0_i32 = arith.constant 0 : i32
    %c0_i32_0 = arith.constant 0 : i32
    %c0_i32_1 = arith.constant 0 : i32
    return %c0_i32, %c0_i32_0 : i32, i32
  }
  func.func @transform_5(%arg0: i32, %arg1: i32) -> (i32, i32, i32, i32) {
    %c0_i32 = arith.constant 0 : i32
    %c0_i32_0 = arith.constant 0 : i32
    %c0_i32_1 = arith.constant 0 : i32
    return %arg0, %arg1, %c0_i32, %c0_i32_0 : i32, i32, i32, i32
  }
}

</mosaic_0001>

<bundles_post_ra>
// kernel: tpu_custom_call.1
= control target key start
LH: loop header
LB: loop body
LE: loop exit
PB: predicated region body
PF: predicated region fallthrough
CT: control target
= control target key end

     0   :  { %s1851_s18 = smov 0   ;;  %s1853_s19 = smov 0   ;;  %s2796_s0 = inlined_call_operand.vmem [shape: f32[2,10,10,10,4], index: 0, kind: input, shape index: {}]   ;;  %s2797_s1 = inlined_call_operand.vmem [shape: f32[2,10,10,10,4], index: 1, kind: input, shape index: {}]   ;;  %s2798_s2 = inlined_call_operand.vmem [shape: f32[2,10,10,10,4], index: 2, kind: input, shape index: {}]   ;;  %s2799_s3 = inlined_call_operand.vmem [shape: f32[27,1,4], index: 3, kind: input, shape index: {}]   ;;  %s2800_s4 = inlined_call_operand.vmem [shape: f32[4,8], index: 4, kind: input, shape index: {}]   ;;  %s2801_s5 = inlined_call_operand.vmem [shape: f32[2,8,64,8], index: 5, kind: output, shape index: {}]  }
   0x1   :  { %s1855_s20 = smov 0   ;;  %s1857_s21 = smov 0  }
   0x2   :  { %s1859_s22 = smov 0  }
   0x3 LB: > { %s24_s23 = sadd.s32 1, %s1811_s20  ;;  %s27_s24 = sadd.s32 1, %s1815_s21  ;;  %s1819_s22 = sphi %s1859_s22, %s15_s22   ;;  %s1815_s21 = sphi %s1857_s21, %s3073_s21   ;;  %s1811_s20 = sphi %s1855_s20, %s3072_s20   ;;  %s1807_s19 = sphi %s1853_s19, %s3071_s19   ;;  %s1803_s18 = sphi %s1851_s18, %s3070_s18  }
   0x4   : > { %p25_p0 = scmp.ge.s32.totalorder %s24_s23, 8  ;;  %p1497_p1 = scmp.ge.s32.totalorder %s1819_s22, 1 }
   0x5   : > { %p247_p2 = scmp.lt.s32.totalorder %s1819_s22, 17 }
   0x6   : > { %s3075_s23 = smov (%p25_p0, %s24_s23), 0  ;;  %s3077_s24 = smov (!%p25_p0, %s27_s24), %s1815_s21 }
   0x7   : > { %p248_p3 = pnand %p1497_p1, %p247_p2  ;;  %p29_p4 = scmp.ge.s32.totalorder %s3077_s24, 2 }
   0x9   : > { %s3079_s24 = smov (%p29_p4, %s3077_s24), 0  ;;  %251 = sbr.rel (%p248_p3) target bundleno = 382 (0x17e), region = 40 }
  0x10   : > { %v1212_v0 = vld [vmem:[%s2800_s4] sm:$0xf]  ;;  %vm1238_vm0 = vcmask 1043456   ;;  %p303_p5 = scmp.lt.s32.totalorder %s1807_s19, 1  ;;  %p305_p6 = scmp.lt.s32.totalorder %s1803_s18, 9  ;;  %vm1213_vm1 = vcmask 31744  }
  0x11   : > { %1721 = vmatprep.subr.msk.mxu0 %vm1238_vm0, %v1212_v0  ;;  %1735 = vmatprep.subr.msk.mxu1 %vm1238_vm0, %v1212_v0  ;;  %s312_s27 = sadd.s32 1, %s1803_s18  ;;  %s323_s6 = sadd.s32 2, %s1803_s18  ;;  %v1899_v1 = vld [vmem:[%s2799_s3] ss:$0 sm:$0xff]  ;;  %v1904_v2 = vld [vmem:[%s2799_s3 + $0x1] ss:$0 sm:$0xff] }
  0x12   : > { %1722 = vmatpush3.msk.msra.mxu0 %vm1238_vm0, %v1212_v0  ;;  %1736 = vmatpush3.msk.msra.mxu1 %vm1238_vm0, %v1212_v0  ;;  %s3081_s19 = smov (!%p303_p5, %s1807_s19), 1  ;;  %p315_p7 = scmp.lt.s32.totalorder %s312_s27, 9  ;;  %v1909_v3 = vld [vmem:[%s2799_s3 + $0x2] ss:$0 sm:$0xff]  ;;  %v1919_v4 = vld [vmem:[%s2799_s3 + $0x3] ss:$0 sm:$0xff] }
  0x13   : > { %s306_s28 = scalar_select %p305_p6, %s1803_s18, 9  ;;  %2907 = vst [vmem:[#allocation2_spill] sm:$0xff] %v1909_v3  ;;  %v1932_v12 = vld [vmem:[%s2799_s3 + $0x4] ss:$0 sm:$0xff]  ;;  %v1939_v16 = vld [vmem:[%s2799_s3 + $0x5] ss:$0 sm:$0xff] }
  0x14   : > { %s1892_s29 = smul.u32 200, %s3081_s19  ;;  %s3083_s27 = smov (!%p315_p7, %s312_s27), 9  ;;  %v1945_v19 = vld [vmem:[%s2799_s3 + $0x6] ss:$0 sm:$0xff]  ;;  %v1956_v21 = vld [vmem:[%s2799_s3 + $0x7] ss:$0 sm:$0xff] }
  0x15   : > { %s1737_s30 = smul.u32 20, %s306_s28  ;;  %p326_p8 = scmp.lt.s32.totalorder %s323_s6, 9  ;;  %v1965_v25 = vld [vmem:[%s2799_s3 + $0x8] ss:$0 sm:$0xff]  ;;  %v1970_v26 = vld [vmem:[%s2799_s3 + $0x9] ss:$0 sm:$0xff] }
  0x16   : > { %s1739_s11 = smul.u32 20, %s3083_s27  ;;  %v1980_v28 = vld [vmem:[%s2799_s3 + $0xa] ss:$0 sm:$0xff]  ;;  %v1993_v34 = vld [vmem:[%s2799_s3 + $0xb] ss:$0 sm:$0xff]  ;;  %p336_p9 = scmp.lt.s32.totalorder %s1803_s18, 7 }
  0x17   : > { %s309_s7 = sadd.s32 %s1892_s29, %s1737_s30  ;;  %s3085_s6 = smov (!%p326_p8, %s323_s6), 9  ;;  %2911 = vst [vmem:[#allocation6_spill] sm:$0xff] %v1993_v34  ;;  %v1998_v35 = vld [vmem:[%s2799_s3 + $0xc] ss:$0 sm:$0xff]  ;;  %v2015_v42 = vld [vmem:[%s2799_s3 + $0xd] ss:$0 sm:$0xff] }
  0x18   : > { %s1498_s10 = sshll.u32 %s309_s7, 3  ;;  %s319_s28 = sadd.s32 %s1739_s11, %s1892_s29  ;;  %2912 = vst [vmem:[#allocation7_spill] sm:$0xff] %v1998_v35  ;;  %v2035_v51 = vld [vmem:[%s2799_s3 + $0xe] ss:$0 sm:$0xff]  ;;  %v2040_v52 = vld [vmem:[%s2799_s3 + $0xf] ss:$0 sm:$0xff] }
  0x19   : > { %s1914_s25 = scalar_lea.vmem %s2796_s0, %s1498_s10  ;;  %s1499_s30 = sshll.u32 %s319_s28, 3  ;;  %v2045_v53 = vld [vmem:[%s2799_s3 + $0x10] ss:$0 sm:$0xff]  ;;  %v2054_v59 = vld [vmem:[%s2799_s3 + $0x11] ss:$0 sm:$0xff]  ;;  %vm1347_vm2 = vcmask 64512  }
  0x1a   : > { %v343_v5 = vld [vmem:[%s1914_s25] sm:$0xff]  ;;  %v1509_v11 = vld [vmem:[%s1914_s25 + $0x10] sm:$0xff]  ;;  %s1740_s11 = smul.u32 20, %s3085_s6  ;;  %s1950_s16 = scalar_lea.vmem %s2797_s1, %s1499_s30 }
  0x1b   : > { %v374_v6 = vld [vmem:[%s1914_s25 + $0x1] sm:$0xff]  ;;  %v358_v8 = vmul.f32 %v1899_v1, %v343_v5  ;;  %v455_v14 = vmul.f32 %v1919_v4, %v1509_v11  ;;  %v1519_v15 = vld [vmem:[%s1914_s25 + $0x11] sm:$0xff]  ;;  %v359_v31 = vmul.f32 %v1509_v11, %v1899_v1  ;;  %s3087_s18 = smov (!%p336_p9, %s1803_s18), 7 }
  0x1c   : > { %v406_v7 = vld [vmem:[%s1914_s25 + $0x2] sm:$0xff]  ;;  %v390_v9 = vmul.f32 %v1904_v2, %v374_v6  ;;  %v487_v18 = vmul.f32 %v1932_v12, %v1519_v15  ;;  %v1529_v20 = vld [vmem:[%s1914_s25 + $0x12] sm:$0xff]  ;;  %s1973_s7 = sadd.s32 %s1740_s11, %s1892_s29  ;;  %v391_v39 = vmul.f32 %v1519_v15, %v1904_v2 }
  0x1d   : > { %v422_v10 = vmul.f32 %v1909_v3, %v406_v7  ;;  %v519_v23 = vmul.f32 %v1939_v16, %v1529_v20  ;;  %v1960_v24 = vld [vmem:[%s1914_s25 + $0x20] sm:$0xff]  ;;  %s1500_s15 = sshll.u32 %s1973_s7, 3  ;;  %v2027_v48 = vld [vmem:[%s1914_s25 + $0x50] sm:$0xff]  ;;  %v423_v62 = vmul.f32 %v1529_v20, %v1909_v3 }
  0x1e   : > { %v398_v13 = vadd.f32 %v390_v9, %v358_v8  ;;  %2908 = vst [vmem:[#allocation3_spill] sm:$0xff] %v1960_v24  ;;  %v552_v27 = vmul.f32 %v1945_v19, %v1960_v24  ;;  %v1983_v29 = vld [vmem:[%s1914_s25 + $0x40] sm:$0xff]  ;;  %2916 = vst [vmem:[#allocation11_spill] sm:$0xff] %v2027_v48  ;;  %v459_v55 = vmul.f32 %v1919_v4, %v2027_v48  ;;  %v1575_v58 = vld [vmem:[%s1950_s16 + $0x10] sm:$0xff]  ;;  %s2063_s10 = scalar_lea.vmem %s2798_s2, %s1500_s15 }
  0x1f   : > { %2909 = vst [vmem:[#allocation4_spill] sm:$0xff] %v1983_v29  ;;  %v1986_v30 = vld [vmem:[%s1914_s25 + $0x41] sm:$0xff]  ;;  %v362_v36 = vmul.f32 %v1899_v1, %v1983_v29  ;;  %v2057_v60 = vld [vmem:[%s1914_s25 + $0x51] sm:$0xff]  ;;  %v399_v61 = vadd.f32 %v391_v39, %v359_v31  ;;  %v2069_v0 = vmul.f32 %v1998_v35, %v1575_v58 }
  0x20   : > { %v430_v17 = vadd.f32 %v422_v10, %v398_v13  ;;  %2910 = vst [vmem:[#allocation5_spill] sm:$0xff] %v1986_v30  ;;  %v632_v33 = vld [vmem:[%s1950_s16] sm:$0xff]  ;;  %v394_v37 = vmul.f32 %v1904_v2, %v1986_v30  ;;  %2917 = vst [vmem:[#allocation12_spill] sm:$0xff] %v2057_v60  ;;  %v1585_v5 = vld [vmem:[%s1950_s16 + $0x11] sm:$0xff]  ;;  %v491_v9 = vmul.f32 %v1932_v12, %v2057_v60 }
  0x21   : > { %v2005_v38 = vld [vmem:[%s1914_s25 + $0x42] sm:$0xff]  ;;  %v648_v50 = vmul.f32 %v1970_v26, %v632_v33  ;;  %v1595_v6 = vld [vmem:[%s1950_s16 + $0x12] sm:$0xff]  ;;  %v2079_v11 = vmul.f32 %v2015_v42, %v1585_v5  ;;  %v2168_v30 = vmul.f32 %v1585_v5, %v1980_v28  ;;  %v2192_v5 = vld [vmem:[%s2799_s3 + $0x1a] ss:$0 sm:$0xff] }
  0x22   : > { %v463_v22 = vadd.f32 %v455_v14, %v430_v17  ;;  %2913 = vst [vmem:[#allocation8_spill] sm:$0xff] %v2005_v38  ;;  %v2009_v40 = vld [vmem:[%s1914_s25 + $0x21] sm:$0xff]  ;;  %v426_v43 = vmul.f32 %v1909_v3, %v2005_v38  ;;  %v402_v54 = vadd.f32 %v394_v37, %v362_v36  ;;  %v2082_v13 = vmul.f32 %v2035_v51, %v1595_v6  ;;  %v2100_v20 = vld [vmem:[%s1914_s25 + $0x52] sm:$0xff] }
  0x23   : > { %2914 = vst [vmem:[#allocation9_spill] sm:$0xff] %v2009_v40  ;;  %v664_v41 = vld [vmem:[%s1950_s16 + $0x1] sm:$0xff]  ;;  %v584_v45 = vmul.f32 %v1956_v21, %v2009_v40  ;;  %2920 = vst [vmem:[#allocation15_spill] sm:$0xff] %v2100_v20  ;;  %v2118_v31 = vld [vmem:[%s2799_s3 + $0x14] ss:$0 sm:$0xff]  ;;  %v523_v36 = vmul.f32 %v1939_v16, %v2100_v20 }
  0x24   : > { %v495_v32 = vadd.f32 %v487_v18, %v463_v22  ;;  %v2023_v46 = vld [vmem:[%s1914_s25 + $0x22] sm:$0xff]  ;;  %v680_v57 = vmul.f32 %v1980_v28, %v664_v41  ;;  %v434_v8 = vadd.f32 %v426_v43, %v402_v54  ;;  %v2097_v18 = vld [vmem:[%s2799_s3 + $0x12] ss:$0 sm:$0xff]  ;;  %v2157_v38 = vld [vmem:[%s2799_s3 + $0x18] ss:$0 sm:$0xff]  ;;  %2927 = vst [vmem:[#allocation22_spill] sm:$0xff] %v2192_v5 }
  0x25   : > { %2915 = vst [vmem:[#allocation10_spill] sm:$0xff] %v2023_v46  ;;  %v696_v47 = vld [vmem:[%s1950_s16 + $0x2] sm:$0xff]  ;;  %v616_v49 = vmul.f32 %v1965_v25, %v2023_v46 }
  0x26   : > { %v527_v44 = vadd.f32 %v519_v23, %v495_v32  ;;  %v2066_v63 = vmul.f32 %v1993_v34, %v696_v47  ;;  %v2074_v7 = vld [vmem:[%s1950_s16 + $0x20] sm:$0xff]  ;;  %v2123_v32 = vld [vmem:[%s2799_s3 + $0x15] ss:$0 sm:$0xff]  ;;  %v467_v33 = vadd.f32 %v459_v55, %v434_v8  ;;  %v488_v47 = vmul.f32 %v2009_v40, %v1932_v12  ;;  %v2140_v55 = vld [vmem:[%s2799_s3 + $0x16] ss:$0 sm:$0xff] }
  0x27   : > { %2918 = vst [vmem:[#allocation13_spill] sm:$0xff] %v2074_v7  ;;  %v2086_v14 = vmul.f32 %v2040_v52, %v2074_v7  ;;  %v2089_v15 = vld [vmem:[%s1950_s16 + $0x21] sm:$0xff]  ;;  %v2152_v8 = vmul.f32 %v1575_v58, %v1970_v26  ;;  %v2175_v58 = vmul.f32 %v2074_v7, %v1998_v35  ;;  %v2187_v40 = vld [vmem:[%s2063_s10 + $0x11] sm:$0xff] }
  0x28   : > { %v560_v56 = vadd.f32 %v552_v27, %v527_v44  ;;  %v2092_v17 = vld [vmem:[%s1950_s16 + $0x22] sm:$0xff]  ;;  %v2104_v22 = vmul.f32 %v2045_v53, %v2089_v15  ;;  %v2113_v27 = vld [vmem:[%s2799_s3 + $0x13] ss:$0 sm:$0xff]  ;;  %v431_v44 = vadd.f32 %v423_v62, %v399_v61  ;;  %v520_v62 = vmul.f32 %v2023_v46, %v1939_v16  ;;  %2926 = vst [vmem:[#allocation21_spill] sm:$0xff] %v2187_v40 }
  0x29   : > { %2919 = vst [vmem:[#allocation14_spill] sm:$0xff] %v2092_v17  ;;  %v2108_v23 = vmul.f32 %v2054_v59, %v2092_v17  ;;  %2921 = vst [vmem:[#allocation16_spill] sm:$0xff] %v2113_v27  ;;  %v922_v39 = vld [vmem:[%s2063_s10] sm:$0xff]  ;;  %v2184_v46 = vld [vmem:[%s2063_s10 + $0x10] sm:$0xff] }
  0x2a   : > { %v592_v10 = vadd.f32 %v584_v45, %v560_v56  ;;  %v954_v41 = vld [vmem:[%s2063_s10 + $0x1] sm:$0xff]  ;;  %v456_v45 = vmul.f32 %v1960_v24, %v1919_v4  ;;  %v499_v56 = vadd.f32 %v491_v9, %v467_v33  ;;  %v2162_v9 = vld [vmem:[%s2799_s3 + $0x19] ss:$0 sm:$0xff]  ;;  %2923 = vst [vmem:[#allocation18_spill] sm:$0xff] %v2175_v58  ;;  %2925 = vst [vmem:[#allocation20_spill] sm:$0xff] %v2184_v46 }
  0x2b   : > { %v2130_v43 = vld [vmem:[%s1914_s25 + $0x60] sm:$0xff]  ;;  %v2181_v29 = vmul.f32 %v2113_v27, %v954_v41  ;;  %v2201_v24 = vmul.f32 %v2123_v32, %v2184_v46  ;;  %v2204_v58 = vld [vmem:[%s2063_s10 + $0x12] sm:$0xff] }
  0x2c   : > { %v624_v37 = vadd.f32 %v616_v49, %v592_v10  ;;  %v986_v54 = vld [vmem:[%s2063_s10 + $0x2] sm:$0xff]  ;;  %v2145_v49 = vld [vmem:[%s2799_s3 + $0x17] ss:$0 sm:$0xff]  ;;  %v556_v61 = vmul.f32 %v1945_v19, %v2130_v43  ;;  %2930 = vst [vmem:[#allocation25_spill] sm:$0xff] %v2204_v58 }
  0x2d   : > { %v2165_v33 = vld [vmem:[%s1914_s25 + $0x61] sm:$0xff]  ;;  %2924 = vst [vmem:[#allocation19_spill] sm:$0xff] %v2181_v29  ;;  %v2197_v41 = vmul.f32 %v2118_v31, %v986_v54  ;;  %2929 = vst [vmem:[#allocation24_spill] sm:$0xff] %v2201_v24  ;;  %v2218_v54 = vmul.f32 %v2145_v49, %v2204_v58  ;;  %v2229_v46 = vld [vmem:[%s1914_s25 + $0x30] sm:$0xff] }
  0x2e   : > { %v656_v10 = vadd.f32 %v648_v50, %v624_v37  ;;  %2922 = vst [vmem:[#allocation17_spill] sm:$0xff] %v2165_v33  ;;  %v2171_v50 = vmul.f32 %v1595_v6, %v1993_v34  ;;  %v2178_v37 = vmul.f32 %v2097_v18, %v922_v39  ;;  %v531_v6 = vadd.f32 %v523_v36, %v499_v56  ;;  %v2207_v29 = vld [vmem:[%s1914_s25 + $0x62] sm:$0xff] }
  0x2f   : > { %v588_v39 = vmul.f32 %v1956_v21, %v2165_v33  ;;  %2928 = vst [vmem:[#allocation23_spill] sm:$0xff] %v2197_v41  ;;  %2931 = vst [vmem:[#allocation26_spill] sm:$0xff] %v2207_v29  ;;  %v2210_v17 = vld [vmem:[%s1950_s16 + $0x40] sm:$0xff]  ;;  %v464_v36 = vadd.f32 %v456_v45, %v431_v44  ;;  %v620_v24 = vmul.f32 %v1965_v25, %v2207_v29 }
  0x30   : > { %v688_v7 = vadd.f32 %v680_v57, %v656_v10  ;;  %2932 = vst [vmem:[#allocation27_spill] sm:$0xff] %v2210_v17  ;;  %v2214_v57 = vmul.f32 %v2140_v55, %v2187_v40  ;;  %2934 = vst [vmem:[#allocation29_spill] sm:$0xff] %v2218_v54  ;;  %v2221_v56 = vld [vmem:[%s2063_s10 + $0x20] sm:$0xff]  ;;  %v564_v10 = vadd.f32 %v556_v61, %v531_v6 }
  0x31   : > { %2935 = vst [vmem:[#allocation30_spill] sm:$0xff] %v2221_v56  ;;  %v2226_v41 = vld [vmem:[%s1950_s16 + $0x41] sm:$0xff]  ;;  %2937 = vst [vmem:[#allocation32_spill] sm:$0xff] %v2229_v46  ;;  %v2234_v45 = vmul.f32 %v2157_v38, %v2221_v56  ;;  %v496_v6 = vadd.f32 %v488_v47, %v464_v36  ;;  %v2258_v56 = vld [vmem:[%s1914_s25 + $0x31] sm:$0xff] }
  0x32   : > { %2933 = vst [vmem:[#allocation28_spill] sm:$0xff] %v2214_v57  ;;  %2936 = vst [vmem:[#allocation31_spill] sm:$0xff] %v2226_v41  ;;  %v720_v44 = vadd.f32 %v2066_v63, %v688_v7  ;;  %v2237_v54 = vld [vmem:[%s2063_s10 + $0x21] sm:$0xff]  ;;  %v553_v57 = vmul.f32 %v1945_v19, %v2229_v46  ;;  %v596_v7 = vadd.f32 %v588_v39, %v564_v10  ;;  %v2264_v46 = vld [vmem:[%s1950_s16 + $0x50] sm:$0xff] }
  0x33   : > { %2938 = vst [vmem:[#allocation33_spill] sm:$0xff] %v2234_v45  ;;  %2939 = vst [vmem:[#allocation34_spill] sm:$0xff] %v2237_v54  ;;  %v2240_v58 = vld [vmem:[%s2063_s10 + $0x22] sm:$0xff]  ;;  %v2249_v40 = vmul.f32 %v2162_v9, %v2237_v54  ;;  %v652_v45 = vmul.f32 %v1970_v26, %v2210_v17  ;;  %v684_v36 = vmul.f32 %v1980_v28, %v2226_v41  ;;  %v2278_v41 = vld [vmem:[%s1950_s16 + $0x52] sm:$0xff] }
  0x34   : > { %2940 = vst [vmem:[#allocation35_spill] sm:$0xff] %v2240_v58  ;;  %v2243_v61 = vld [vmem:[%s1950_s16 + $0x42] sm:$0xff]  ;;  %v2253_v63 = vmul.f32 %v2192_v5, %v2240_v58  ;;  %2944 = vst [vmem:[#allocation39_spill] sm:$0xff] %v2258_v56  ;;  %v753_v47 = vadd.f32 %v2069_v0, %v720_v44  ;;  %v528_v54 = vadd.f32 %v520_v62, %v496_v6 }
  0x35   : > { %2941 = vst [vmem:[#allocation36_spill] sm:$0xff] %v2243_v61  ;;  %2942 = vst [vmem:[#allocation37_spill] sm:$0xff] %v2249_v40  ;;  %v2267_v40 = vld [vmem:[%s1950_s16 + $0x51] sm:$0xff]  ;;  %v585_v39 = vmul.f32 %v1956_v21, %v2258_v56  ;;  %v628_v10 = vadd.f32 %v620_v24, %v596_v7  ;;  %v716_v17 = vmul.f32 %v1993_v34, %v2243_v61  ;;  %v2287_v6 = vld [vmem:[%s1950_s16 + $0x60] sm:$0xff] }
  0x36   : > { %2943 = vst [vmem:[#allocation38_spill] sm:$0xff] %v2253_v63  ;;  %2945 = vst [vmem:[#allocation40_spill] sm:$0xff] %v2264_v46  ;;  %v749_v0 = vmul.f32 %v1998_v35, %v2264_v46  ;;  %v781_v44 = vmul.f32 %v2015_v42, %v2267_v40  ;;  %v2281_v63 = vld [vmem:[%s1914_s25 + $0x32] sm:$0xff]  ;;  %v785_v62 = vadd.f32 %v2079_v11, %v753_v47  ;;  %v2296_v56 = vld [vmem:[%s1950_s16 + $0x61] sm:$0xff] }
  0x37   : > { %2946 = vst [vmem:[#allocation41_spill] sm:$0xff] %v2267_v40  ;;  %2947 = vst [vmem:[#allocation42_spill] sm:$0xff] %v2278_v41  ;;  %v813_v24 = vmul.f32 %v2035_v51, %v2278_v41  ;;  %v561_v7 = vadd.f32 %v553_v57, %v528_v54  ;;  %v617_v61 = vmul.f32 %v1965_v25, %v2281_v63  ;;  %v2299_v34 = vld [vmem:[%s2063_s10 + $0x40] sm:$0xff] }
  0x38   : > { %2948 = vst [vmem:[#allocation43_spill] sm:$0xff] %v2281_v63  ;;  %2949 = vst [vmem:[#allocation44_spill] sm:$0xff] %v2287_v6  ;;  %v660_v58 = vadd.f32 %v652_v45, %v628_v10  ;;  %v2293_v35 = vmul.f32 %v2040_v52, %v2287_v6  ;;  %v2302_v40 = vld [vmem:[%s2063_s10 + $0x41] sm:$0xff]  ;;  %v363_v11 = vmul.f32 %v2027_v48, %v1899_v1 }
  0x39   : > { %2950 = vst [vmem:[#allocation45_spill] sm:$0xff] %v2296_v56  ;;  %2951 = vst [vmem:[#allocation46_spill] sm:$0xff] %v2299_v34  ;;  %v395_v57 = vmul.f32 %v2057_v60, %v1904_v2  ;;  %v817_v54 = vadd.f32 %v2082_v13, %v785_v62  ;;  %v2311_v45 = vmul.f32 %v2045_v53, %v2296_v56  ;;  %v2314_v47 = vld [vmem:[%s1950_s16 + $0x62] sm:$0xff] }
  0x3a   : > { %2952 = vst [vmem:[#allocation47_spill] sm:$0xff] %v2302_v40  ;;  %2953 = vst [vmem:[#allocation48_spill] sm:$0xff] %v2314_v47  ;;  %v2317_v10 = vld [vmem:[%s2063_s10 + $0x42] sm:$0xff]  ;;  %v593_v63 = vadd.f32 %v585_v39, %v561_v7  ;;  %v427_v6 = vmul.f32 %v2100_v20, %v1909_v3  ;;  %v692_v48 = vadd.f32 %v684_v36, %v660_v58 }
  0x3b   : > { %2954 = vst [vmem:[#allocation49_spill] sm:$0xff] %v2317_v10  ;;  %v2323_v60 = vmul.f32 %v2054_v59, %v2314_v47  ;;  %v403_v13 = vadd.f32 %v395_v57, %v363_v11  ;;  %v460_v62 = vmul.f32 %v2130_v43, %v1919_v4  ;;  %v850_v56 = vadd.f32 %v2086_v14, %v817_v54  ;;  %v2341_v11 = vld [vmem:[%s2063_s10 + $0x50] sm:$0xff] }
  0x3c   : > { %v2330_v41 = vmul.f32 %v2097_v18, %v2299_v34  ;;  %v2334_v39 = vmul.f32 %v2113_v27, %v2302_v40  ;;  %v625_v58 = vadd.f32 %v617_v61, %v593_v63  ;;  %v724_v36 = vadd.f32 %v716_v17, %v692_v48  ;;  %2955 = vst [vmem:[#allocation50_spill] sm:$0xff] %v2341_v11  ;;  %v2344_v57 = vld [vmem:[%s2063_s10 + $0x51] sm:$0xff] }
  0x3d   : > { %v2338_v7 = vmul.f32 %v2118_v31, %v2317_v10  ;;  %2956 = vst [vmem:[#allocation51_spill] sm:$0xff] %v2344_v57  ;;  %v435_v14 = vadd.f32 %v427_v6, %v403_v13  ;;  %v492_v54 = vmul.f32 %v2165_v33, %v1932_v12  ;;  %v882_v20 = vadd.f32 %v2104_v22, %v850_v56  ;;  %v2358_v17 = vld [vmem:[%s2063_s10 + $0x52] sm:$0xff]  ;;  %v2366_v10 = vld [vmem:[%s2063_s10 + $0x60] sm:$0xff] }
  0x3e   : > { %v2351_v61 = vmul.f32 %v2123_v32, %v2341_v11  ;;  %v2355_v48 = vmul.f32 %v2140_v55, %v2344_v57  ;;  %2957 = vst [vmem:[#allocation52_spill] sm:$0xff] %v2358_v17  ;;  %v657_v63 = vadd.f32 %v2152_v8, %v625_v58  ;;  %v757_v6 = vadd.f32 %v749_v0, %v724_v36  ;;  %v2369_v22 = vld [vmem:[%s2063_s10 + $0x61] sm:$0xff]  ;;  %v2387_v36 = vld [vmem:[%s1914_s25 + $0x70] sm:$0xff] }
  0x3f   : > { %v2363_v13 = vmul.f32 %v2145_v49, %v2358_v17  ;;  %2958 = vst [vmem:[#allocation53_spill] sm:$0xff] %v2366_v10  ;;  %2959 = vst [vmem:[#allocation54_spill] sm:$0xff] %v2369_v22  ;;  %v468_v56 = vadd.f32 %v460_v62, %v435_v14  ;;  %v524_v40 = vmul.f32 %v2207_v29, %v1939_v16  ;;  %v2383_v58 = vld [vmem:[%s2063_s10 + $0x62] sm:$0xff]  ;;  %v2973_v29 = vld [vmem:[#allocation20_spill] sm:$0xff] }
  0x40   : > { %v914_v34 = vadd.f32 %v2108_v23, %v882_v20  ;;  %v2376_v8 = vmul.f32 %v2157_v38, %v2366_v10  ;;  %v2380_v0 = vmul.f32 %v2162_v9, %v2369_v22  ;;  %2962 = vst [vmem:[#allocation57_spill] sm:$0xff] %v2383_v58  ;;  %v689_v62 = vadd.f32 %v2168_v30, %v657_v63  ;;  %v2965_v30 = vld [vmem:[#allocation14_spill] sm:$0xff] }
  0x41   : > { %2963 = vst [vmem:[#allocation58_spill] sm:$0xff] %v2387_v36  ;;  %v789_v14 = vadd.f32 %v781_v44, %v757_v6  ;;  %v2391_v20 = vmul.f32 %v2192_v5, %v2383_v58  ;;  %v500_v23 = vadd.f32 %v492_v54, %v468_v56  ;;  %v557_v10 = vmul.f32 %v1945_v19, %v2387_v36  ;;  %v2402_v44 = vld [vmem:[%s1950_s16 + $0x30] sm:$0xff] }
  0x42   : > { %2960 = vst [vmem:[#allocation55_spill] sm:$0xff] %v2376_v8  ;;  %2961 = vst [vmem:[#allocation56_spill] sm:$0xff] %v2380_v0  ;;  %v946_v22 = vadd.f32 %v2178_v37, %v914_v34  ;;  %v721_v17 = vadd.f32 %v2171_v50, %v689_v62  ;;  %v778_v57 = vmul.f32 %v2089_v15, %v2015_v42  ;;  %v2405_v6 = vld [vmem:[%s1914_s25 + $0x71] sm:$0xff]  ;;  %v2970_v62 = vld [vmem:[#allocation19_spill] sm:$0xff] }
  0x43   : > { %2964 = vst [vmem:[#allocation59_spill] sm:$0xff] %v2391_v20  ;;  %v810_v63 = vmul.f32 %v2965_v30, %v2035_v51  ;;  %2966 = vst [vmem:[#allocation60_spill] sm:$0xff] %v2402_v44  ;;  %v821_v58 = vadd.f32 %v813_v24, %v789_v14  ;;  %v843_v54 = vmul.f32 %v2040_v52, %v2402_v44  ;;  %v2410_v56 = vld [vmem:[%s1950_s16 + $0x31] sm:$0xff]  ;;  %v2971_v20 = vld [vmem:[#allocation18_spill] sm:$0xff] }
  0x44   : > { %2967 = vst [vmem:[#allocation61_spill] sm:$0xff] %v2405_v6  ;;  %2968 = vst [vmem:[#allocation62_spill] sm:$0xff] %v2410_v56  ;;  %v2413_v34 = vld [vmem:[%s1950_s16 + $0x32] sm:$0xff]  ;;  %v532_v37 = vadd.f32 %v524_v40, %v500_v23  ;;  %v589_v50 = vmul.f32 %v1956_v21, %v2405_v6  ;;  %v978_v5 = vadd.f32 %v2970_v62, %v946_v22  ;;  %v2974_v22 = vld [vmem:[#allocation23_spill] sm:$0xff] }
  0x45   : > { %2969 = vst [vmem:[#allocation63_spill] sm:$0xff] %v2413_v34  ;;  %v754_v0 = vadd.f32 %v2971_v20, %v721_v17  ;;  %v875_v36 = vmul.f32 %v2045_v53, %v2410_v56  ;;  %v907_v24 = vmul.f32 %v2054_v59, %v2413_v34  ;;  %v2424_v14 = vld [vmem:[%s1914_s25 + $0x72] sm:$0xff]  ;;  %v854_v44 = vadd.f32 %v2293_v35, %v821_v58  ;;  %v2975_v56 = vld [vmem:[#allocation3_spill] sm:$0xff] }
  0x46   : > { %2972 = vst [vmem:[#allocation19_spill] sm:$0xff] %v2424_v14  ;;  %v939_v40 = vmul.f32 %v2973_v29, %v2097_v18  ;;  %v565_v23 = vadd.f32 %v557_v10, %v532_v37  ;;  %v621_v6 = vmul.f32 %v1965_v25, %v2424_v14  ;;  %v1010_v62 = vadd.f32 %v2974_v22, %v978_v5  ;;  %v2976_v35 = vld [vmem:[#allocation9_spill] sm:$0xff]  ;;  %v2977_v29 = vld [vmem:[#allocation10_spill] sm:$0xff]  ;;  %v2978_v37 = vld [vmem:[#allocation24_spill] sm:$0xff] }
  0x47   : > { %v786_v17 = vadd.f32 %v778_v57, %v754_v0  ;;  %v653_v20 = vmul.f32 %v2264_v46, %v1970_v26  ;;  %v360_v34 = vmul.f32 %v2975_v56, %v1899_v1  ;;  %v886_v30 = vadd.f32 %v2311_v45, %v854_v44  ;;  %v2979_v5 = vld [vmem:[#allocation21_spill] sm:$0xff] }
  0x48   : > { %v597_v33 = vadd.f32 %v589_v50, %v565_v23  ;;  %v392_v58 = vmul.f32 %v2976_v35, %v1904_v2  ;;  %v424_v10 = vmul.f32 %v2977_v29, %v1909_v3  ;;  %v1043_v14 = vadd.f32 %v2978_v37, %v1010_v62  ;;  %v2980_v0 = vld [vmem:[#allocation41_spill] sm:$0xff]  ;;  %v2981_v50 = vld [vmem:[#allocation32_spill] sm:$0xff]  ;;  %v2985_v37 = vld [vmem:[#allocation42_spill] sm:$0xff] }
  0x49   : > { %v818_v8 = vadd.f32 %v810_v63, %v786_v17  ;;  %v971_v57 = vmul.f32 %v2979_v5, %v2113_v27  ;;  %v685_v22 = vmul.f32 %v2980_v0, %v1980_v28  ;;  %v918_v56 = vadd.f32 %v2323_v60, %v886_v30  ;;  %v2982_v35 = vld [vmem:[#allocation28_spill] sm:$0xff]  ;;  %v2983_v62 = vld [vmem:[#allocation25_spill] sm:$0xff]  ;;  %v2984_v17 = vld [vmem:[#allocation6_spill] sm:$0xff] }
  0x4a   : > { %v629_v45 = vadd.f32 %v621_v6, %v597_v33  ;;  %v400_v44 = vadd.f32 %v392_v58, %v360_v34  ;;  %v457_v23 = vmul.f32 %v2981_v50, %v1919_v4  ;;  %v1075_v46 = vadd.f32 %v2982_v35, %v1043_v14  ;;  %v2986_v60 = vld [vmem:[#allocation39_spill] sm:$0xff]  ;;  %v2987_v30 = vld [vmem:[#allocation29_spill] sm:$0xff]  ;;  %v2988_v58 = vld [vmem:[#allocation30_spill] sm:$0xff] }
  0x4b   : > { %v851_v29 = vadd.f32 %v843_v54, %v818_v8  ;;  %v1003_v63 = vmul.f32 %v2983_v62, %v2118_v31  ;;  %v717_v5 = vmul.f32 %v2985_v37, %v2984_v17  ;;  %v950_v27 = vadd.f32 %v2330_v41, %v918_v56  ;;  %v2989_v8 = vld [vmem:[#allocation7_spill] sm:$0xff]  ;;  %v2990_v54 = vld [vmem:[#allocation44_spill] sm:$0xff] }
  0x4c   : > { %v661_v0 = vadd.f32 %v653_v20, %v629_v45  ;;  %v432_v3 = vadd.f32 %v424_v10, %v400_v44  ;;  %v489_v33 = vmul.f32 %v2986_v60, %v1932_v12  ;;  %v1107_v6 = vadd.f32 %v2987_v30, %v1075_v46  ;;  %v2991_v41 = vld [vmem:[#allocation43_spill] sm:$0xff]  ;;  %v2992_v10 = vld [vmem:[#allocation33_spill] sm:$0xff]  ;;  %v2993_v46 = vld [vmem:[#allocation34_spill] sm:$0xff] }
  0x4d   : > { %v883_v34 = vadd.f32 %v875_v36, %v851_v29  ;;  %v1036_v14 = vmul.f32 %v2988_v58, %v2123_v32  ;;  %v750_v35 = vmul.f32 %v2990_v54, %v2989_v8  ;;  %v982_v62 = vadd.f32 %v2334_v39, %v950_v27  ;;  %v2994_v44 = vld [vmem:[#allocation45_spill] sm:$0xff]  ;;  %v2995_v39 = vld [vmem:[#allocation4_spill] sm:$0xff] }
  0x4e   : > { %v693_v50 = vadd.f32 %v685_v22, %v661_v0  ;;  %v465_v37 = vadd.f32 %v457_v23, %v432_v3  ;;  %v521_v20 = vmul.f32 %v2991_v41, %v1939_v16  ;;  %v1140_v56 = vadd.f32 %v2992_v10, %v1107_v6  ;;  %v2996_v0 = vld [vmem:[#allocation37_spill] sm:$0xff]  ;;  %v2997_v6 = vld [vmem:[#allocation35_spill] sm:$0xff] }
  0x4f   : > { %v915_v45 = vadd.f32 %v907_v24, %v883_v34  ;;  %v1068_v36 = vmul.f32 %v2993_v46, %v2140_v55  ;;  %v782_v29 = vmul.f32 %v2994_v44, %v2015_v42  ;;  %v1014_v30 = vadd.f32 %v2338_v7, %v982_v62  ;;  %v2480_v7 = vld [vmem:[%s2063_s10 + $0x30] sm:$0xff] }
  0x50   : > { %v725_v58 = vadd.f32 %v717_v5, %v693_v50  ;;  %v497_v27 = vadd.f32 %v489_v33, %v465_v37  ;;  %v554_v3 = vmul.f32 %v1945_v19, %v2995_v39  ;;  %v1172_v22 = vadd.f32 %v2996_v0, %v1140_v56  ;;  %2998 = vst [vmem:[#allocation18_spill] sm:$0xff] %v2480_v7  ;;  %v2483_v37 = vld [vmem:[%s1950_s16 + $0x70] sm:$0xff]  ;;  %v3000_v33 = vld [vmem:[#allocation5_spill] sm:$0xff] }
  0x51   : > { %v947_v23 = vadd.f32 %v939_v40, %v915_v45  ;;  %v1100_v24 = vmul.f32 %v2997_v6, %v2145_v49  ;;  %v814_v34 = vmul.f32 %v2314_v47, %v2035_v51  ;;  %v1047_v10 = vadd.f32 %v2351_v61, %v1014_v30  ;;  %2999 = vst [vmem:[#allocation20_spill] sm:$0xff] %v2483_v37  ;;  %v3001_v40 = vld [vmem:[#allocation38_spill] sm:$0xff]  ;;  %v2494_v30 = vld [vmem:[%s2063_s10 + $0x31] sm:$0xff] }
  0x52   : > { %v758_v50 = vadd.f32 %v750_v35, %v725_v58  ;;  %v529_v5 = vadd.f32 %v521_v20, %v497_v27  ;;  %v586_v62 = vmul.f32 %v1956_v21, %v3000_v33  ;;  %v1204_v56 = vadd.f32 %v3001_v40, %v1172_v22  ;;  %3002 = vst [vmem:[#allocation23_spill] sm:$0xff] %v2494_v30  ;;  %v2497_v35 = vld [vmem:[%s1950_s16 + $0x71] sm:$0xff] }
  0x53   : > { %v979_v45 = vadd.f32 %v971_v57, %v947_v23  ;;  %v1133_v0 = vmul.f32 %v2157_v38, %v2480_v7  ;;  %v847_v6 = vmul.f32 %v2040_v52, %v2483_v37  ;;  %v1079_v61 = vadd.f32 %v2355_v48, %v1047_v10  ;;  %3003 = vst [vmem:[#allocation3_spill] sm:$0xff] %v2497_v35  ;;  %v2500_v20 = vld [vmem:[%s1950_s16 + $0x72] sm:$0xff] }
  0x54   : > { %v790_v58 = vadd.f32 %v782_v29, %v758_v50  ;;  %3004 = vst [vmem:[#allocation9_spill] sm:$0xff] %v2500_v20  ;;  %v562_v27 = vadd.f32 %v554_v3, %v529_v5  ;;  %v3005_v47 = vld [vmem:[#allocation8_spill] sm:$0xff]  ;;  %1723 = vmatprep.mubr.msk.f32.mxu0 %vm1213_vm1, %v1204_v56  ;;  %v1165_v23 = vmul.f32 %v2162_v9, %v2494_v30  ;;  %v3006_v3 = vld [vmem:[#allocation13_spill] sm:$0xff]  ;;  %v3007_v30 = vld [vmem:[#allocation55_spill] sm:$0xff] }
  0x55   : > { %v618_v22 = vmul.f32 %v1965_v25, %v3005_v47  ;;  %v1011_v57 = vadd.f32 %v1003_v63, %v979_v45  ;;  %v879_v48 = vmul.f32 %v2045_v53, %v2497_v35  ;;  %v911_v29 = vmul.f32 %v2054_v59, %v2500_v20  ;;  %v3013_v37 = vld [vmem:[#allocation56_spill] sm:$0xff] }
  0x56   : > { %v1111_v10 = vadd.f32 %v2363_v13, %v1079_v61  ;;  %v822_v50 = vadd.f32 %v814_v34, %v790_v58  ;;  %v594_v40 = vadd.f32 %v586_v62, %v562_v27  ;;  %v650_v5 = vmul.f32 %v3006_v3, %v1970_v26  ;;  %v3008_v34 = vld [vmem:[#allocation17_spill] sm:$0xff]  ;;  %v3010_v27 = vld [vmem:[#allocation2_spill] sm:$0xff] }
  0x57   : > { %v1044_v7 = vadd.f32 %v1036_v14, %v1011_v57  ;;  %v943_v63 = vmul.f32 %v2341_v11, %v2097_v18  ;;  %v682_v56 = vmul.f32 %v2089_v15, %v1980_v28  ;;  %v364_v45 = vmul.f32 %v2130_v43, %v1899_v1  ;;  %v3009_v14 = vld [vmem:[#allocation14_spill] sm:$0xff]  ;;  %v2538_v33 = vld [vmem:[%s2063_s10 + $0x32] sm:$0xff] }
  0x58   : > { %v1144_v35 = vadd.f32 %v3007_v30, %v1111_v10  ;;  %v855_v20 = vadd.f32 %v847_v6, %v822_v50  ;;  %v626_v13 = vadd.f32 %v618_v22, %v594_v40  ;;  %v396_v62 = vmul.f32 %v3008_v34, %v1904_v2  ;;  %v3011_v57 = vld [vmem:[#allocation26_spill] sm:$0xff]  ;;  %v3014_v22 = vld [vmem:[#allocation16_spill] sm:$0xff]  ;;  %v3015_v50 = vld [vmem:[#allocation51_spill] sm:$0xff] }
  0x59   : > { %v1076_v61 = vadd.f32 %v1068_v36, %v1044_v7  ;;  %v714_v58 = vmul.f32 %v3009_v14, %v2984_v17  ;;  %v428_v3 = vmul.f32 %v3011_v57, %v3010_v27  ;;  %v3012_v15 = vld [vmem:[#allocation58_spill] sm:$0xff]  ;;  %v975_v40 = vmul.f32 %v3015_v50, %v3014_v22  ;;  %v3016_v36 = vld [vmem:[#allocation60_spill] sm:$0xff]  ;;  %v3017_v34 = vld [vmem:[#allocation61_spill] sm:$0xff] }
  0x5a   : > { %v461_v11 = vmul.f32 %v3012_v15, %v1919_v4  ;;  %v1176_v43 = vadd.f32 %v3013_v37, %v1144_v35  ;;  %v887_v47 = vadd.f32 %v879_v48, %v855_v20  ;;  %v658_v30 = vadd.f32 %v650_v5, %v626_v13  ;;  %v3018_v17 = vld [vmem:[#allocation59_spill] sm:$0xff]  ;;  %v3020_v5 = vld [vmem:[#allocation52_spill] sm:$0xff]  ;;  %v3021_v13 = vld [vmem:[#allocation62_spill] sm:$0xff] }
  0x5b   : > { %v404_v6 = vadd.f32 %v396_v62, %v364_v45  ;;  %v1108_v10 = vadd.f32 %v1100_v24, %v1076_v61  ;;  %v747_v7 = vmul.f32 %v3016_v36, %v2989_v8  ;;  %v493_v14 = vmul.f32 %v3017_v34, %v1932_v12  ;;  %v3019_v24 = vld [vmem:[#allocation22_spill] sm:$0xff] }
  0x5c   : > { %v1208_v57 = vadd.f32 %v3018_v17, %v1176_v43  ;;  %v919_v15 = vadd.f32 %v911_v29, %v887_v47  ;;  %v690_v37 = vadd.f32 %v682_v56, %v658_v30  ;;  %v1197_v48 = vmul.f32 %v3019_v24, %v2538_v33  ;;  %v3022_v47 = vld [vmem:[#allocation19_spill] sm:$0xff]  ;;  %v3023_v56 = vld [vmem:[#allocation53_spill] sm:$0xff] }
  0x5d   : > { %v436_v35 = vadd.f32 %v428_v3, %v404_v6  ;;  %v1141_v20 = vadd.f32 %v1133_v0, %v1108_v10  ;;  %v1007_v45 = vmul.f32 %v3020_v5, %v2118_v31  ;;  %v779_v62 = vmul.f32 %v3021_v13, %v2015_v42  ;;  %v3024_v30 = vld [vmem:[#allocation63_spill] sm:$0xff]  ;;  %v2554_v10 = vld [vmem:[%s1914_s25 + $0x80] sm:$0xff] }
  0x5e   : > { %1729 = vmatprep.mubr.msk.f32.mxu1 %vm1213_vm1, %v1208_v57  ;;  %v951_v17 = vadd.f32 %v943_v63, %v919_v15  ;;  %v722_v61 = vadd.f32 %v714_v58, %v690_v37  ;;  %v525_v29 = vmul.f32 %v3022_v47, %v1939_v16  ;;  %v1040_v3 = vmul.f32 %v3023_v56, %v2123_v32  ;;  %v3025_v58 = vld [vmem:[#allocation54_spill] sm:$0xff] }
  0x5f   : > { %v469_v43 = vadd.f32 %v461_v11, %v436_v35  ;;  %v1173_v0 = vadd.f32 %v1165_v23, %v1141_v20  ;;  %v811_v6 = vmul.f32 %v3024_v30, %v2035_v51  ;;  %v558_v63 = vmul.f32 %v1945_v19, %v2554_v10  ;;  %v3026_v23 = vld [vmem:[#allocation27_spill] sm:$0xff]  ;;  %v2566_v30 = vld [vmem:[%s2063_s10 + $0x70] sm:$0xff] }
  0x60   : > { %v983_v5 = vadd.f32 %v975_v40, %v951_v17  ;;  %v755_v50 = vadd.f32 %v747_v7, %v722_v61  ;;  %v1072_v15 = vmul.f32 %v3025_v58, %v2140_v55  ;;  %v844_v37 = vmul.f32 %v2040_v52, %v3026_v23  ;;  %v2563_v35 = vld [vmem:[%s1914_s25 + $0x81] sm:$0xff]  ;;  %3027 = vst [vmem:[#allocation10_spill] sm:$0xff] %v2566_v30 }
  0x61   : > { %v501_v57 = vadd.f32 %v493_v14, %v469_v43  ;;  %v1205_v11 = vadd.f32 %v1197_v48, %v1173_v0  ;;  %v590_v7 = vmul.f32 %v1956_v21, %v2563_v35  ;;  %v3028_v14 = vld [vmem:[#allocation57_spill] sm:$0xff]  ;;  %v1137_v17 = vmul.f32 %v2157_v38, %v2566_v30  ;;  %v3029_v61 = vld [vmem:[#allocation31_spill] sm:$0xff]  ;;  %v3031_v0 = vld [vmem:[#allocation36_spill] sm:$0xff] }
  0x62   : > { %v1015_v20 = vadd.f32 %v1007_v45, %v983_v5  ;;  %v787_v56 = vadd.f32 %v779_v62, %v755_v50  ;;  %v1104_v48 = vmul.f32 %v3028_v14, %v2145_v49  ;;  %v876_v43 = vmul.f32 %v2045_v53, %v3029_v61  ;;  %v2578_v5 = vld [vmem:[%s1914_s25 + $0x82] sm:$0xff]  ;;  %v3032_v30 = vld [vmem:[#allocation32_spill] sm:$0xff] }
  0x63   : > { %v533_v40 = vadd.f32 %v525_v29, %v501_v57  ;;  %1724 = vmatmul.mubr.msk.f32.vlgmr.msra.gmra.mrb[0].mxu0 %vm1213_vm1, %v1205_v11  ;;  %3030 = vst [vmem:[#allocation24_spill] sm:$0xff] %v2578_v5  ;;  %v622_v29 = vmul.f32 %v1965_v25, %v2578_v5  ;;  %v908_v57 = vmul.f32 %v2054_v59, %v3031_v0 }
  0x64   : > { %v1048_v45 = vadd.f32 %v1040_v3, %v1015_v20  ;;  %v819_v50 = vadd.f32 %v811_v6, %v787_v56  ;;  %v654_v11 = vmul.f32 %v2990_v54, %v1970_v26  ;;  %v361_v14 = vmul.f32 %v3032_v30, %v1899_v1  ;;  %v2591_v3 = vld [vmem:[%s2063_s10 + $0x71] sm:$0xff] }
  0x65   : > { %v566_v62 = vadd.f32 %v558_v63, %v533_v40  ;;  %v393_v61 = vmul.f32 %v2986_v60, %v1904_v2  ;;  %3033 = vst [vmem:[#allocation21_spill] sm:$0xff] %v2591_v3  ;;  %v425_v63 = vmul.f32 %v2991_v41, %v3010_v27  ;;  %v1169_v20 = vmul.f32 %v2162_v9, %v2591_v3  ;;  %v3034_v40 = vld [vmem:[#allocation30_spill] sm:$0xff]  ;;  %v2602_v60 = vld [vmem:[%s2063_s10 + $0x72] sm:$0xff] }
  0x66   : > { %v1080_v23 = vadd.f32 %v1072_v15, %v1048_v45  ;;  %v852_v56 = vadd.f32 %v844_v37, %v819_v50  ;;  %v940_v54 = vmul.f32 %v3034_v40, %v2097_v18  ;;  %v458_v30 = vmul.f32 %v1919_v4, %v2995_v39  ;;  %3035 = vst [vmem:[#allocation28_spill] sm:$0xff] %v2602_v60  ;;  %v3038_v40 = vld [vmem:[#allocation48_spill] sm:$0xff] }
  0x67   : > { %v598_v6 = vadd.f32 %v590_v7, %v566_v62  ;;  %v401_v0 = vadd.f32 %v393_v61, %v361_v14  ;;  %v686_v37 = vmul.f32 %v2994_v44, %v1980_v28  ;;  %v1201_v41 = vmul.f32 %v3019_v24, %v2602_v60  ;;  %v3036_v62 = vld [vmem:[#allocation5_spill] sm:$0xff] }
  0x68   : > { %v1112_v58 = vadd.f32 %v1104_v48, %v1080_v23  ;;  %v884_v15 = vadd.f32 %v876_v43, %v852_v56  ;;  %v972_v7 = vmul.f32 %v2993_v46, %v3014_v22  ;;  %v490_v14 = vmul.f32 %v1932_v12, %v3036_v62  ;;  %v3037_v48 = vld [vmem:[#allocation6_spill] sm:$0xff] }
  0x69   : > { %v630_v45 = vadd.f32 %v622_v29, %v598_v6  ;;  %v433_v50 = vadd.f32 %v425_v63, %v401_v0  ;;  %v718_v43 = vmul.f32 %v3038_v40, %v3037_v48  ;;  %v3039_v29 = vld [vmem:[#allocation35_spill] sm:$0xff]  ;;  %v3040_v6 = vld [vmem:[#allocation8_spill] sm:$0xff] }
  0x6a   : > { %v1145_v61 = vadd.f32 %v1137_v17, %v1112_v58  ;;  %v916_v39 = vadd.f32 %v908_v57, %v884_v15  ;;  %v1004_v56 = vmul.f32 %v3039_v29, %v2118_v31  ;;  %v522_v60 = vmul.f32 %v1939_v16, %v3040_v6  ;;  %v3041_v0 = vld [vmem:[#allocation20_spill] sm:$0xff]  ;;  %v3042_v58 = vld [vmem:[#allocation18_spill] sm:$0xff]  ;;  %v3049_v6 = vld [vmem:[#allocation15_spill] sm:$0xff] }
  0x6b   : > { %v662_v23 = vadd.f32 %v654_v11, %v630_v45  ;;  %v466_v44 = vadd.f32 %v458_v30, %v433_v50  ;;  %v751_v63 = vmul.f32 %v3041_v0, %v2989_v8  ;;  %v1037_v17 = vmul.f32 %v3042_v58, %v2123_v32  ;;  %v3043_v11 = vld [vmem:[#allocation11_spill] sm:$0xff] }
  0x6c   : > { %v1177_v3 = vadd.f32 %v1169_v20, %v1145_v61  ;;  %v948_v5 = vadd.f32 %v940_v54, %v916_v39  ;;  %v555_v15 = vmul.f32 %v1945_v19, %v3043_v11  ;;  %v3044_v50 = vld [vmem:[#allocation3_spill] sm:$0xff]  ;;  %v3046_v61 = vld [vmem:[#allocation12_spill] sm:$0xff] }
  0x6d   : > { %v694_v46 = vadd.f32 %v686_v37, %v662_v23  ;;  %v498_v57 = vadd.f32 %v490_v14, %v466_v44  ;;  %v783_v40 = vmul.f32 %v3044_v50, %v2015_v42  ;;  %v3045_v20 = vld [vmem:[#allocation23_spill] sm:$0xff]  ;;  %v587_v39 = vmul.f32 %v1956_v21, %v3046_v61 }
  0x6e   : > { %v1209_v45 = vadd.f32 %v1201_v41, %v1177_v3  ;;  %v980_v62 = vadd.f32 %v972_v7, %v948_v5  ;;  %v1069_v54 = vmul.f32 %v3045_v20, %v2140_v55  ;;  %v1101_v23 = vmul.f32 %v2538_v33, %v2145_v49  ;;  %v3047_v5 = vld [vmem:[#allocation9_spill] sm:$0xff]  ;;  %v2636_v7 = vld [vmem:[%s1950_s16 + $0x80] sm:$0xff] }
  0x6f   : > { %v726_v30 = vadd.f32 %v718_v43, %v694_v46  ;;  %v530_v37 = vadd.f32 %v522_v60, %v498_v57  ;;  %v815_v41 = vmul.f32 %v3047_v5, %v2035_v51  ;;  %v3048_v43 = vld [vmem:[#allocation46_spill] sm:$0xff]  ;;  %v848_v60 = vmul.f32 %v2040_v52, %v2636_v7 }
  0x70   : > { %1730 = vmatmul.mubr.msk.f32.vlgmr.msra.gmra.mrb[0].mxu1 %vm1213_vm1, %v1209_v45  ;;  %v1012_v14 = vadd.f32 %v1004_v56, %v980_v62  ;;  %v1134_v29 = vmul.f32 %v2157_v38, %v3048_v43  ;;  %v619_v56 = vmul.f32 %v1965_v25, %v3049_v6  ;;  %v2645_v11 = vld [vmem:[%s1950_s16 + $0x81] sm:$0xff]  ;;  %v397_v62 = vmul.f32 %v3017_v34, %v1904_v2  ;;  %v3052_v6 = vld [vmem:[#allocation49_spill] sm:$0xff] }
  0x71   : > { %v759_v3 = vadd.f32 %v751_v63, %v726_v30  ;;  %v563_v44 = vadd.f32 %v555_v15, %v530_v37  ;;  %v3050_v63 = vld [vmem:[#allocation58_spill] sm:$0xff]  ;;  %v880_v30 = vmul.f32 %v2045_v53, %v2645_v11  ;;  %v651_v15 = vmul.f32 %v3016_v36, %v1970_v26  ;;  %v3051_v2 = vld [vmem:[#allocation47_spill] sm:$0xff] }
  0x72   : > { %v1045_v46 = vadd.f32 %v1037_v17, %v1012_v14  ;;  %v365_v45 = vmul.f32 %v3050_v63, %v1899_v1  ;;  %v429_v37 = vmul.f32 %v3022_v47, %v3010_v27  ;;  %v2658_v14 = vld [vmem:[%s1950_s16 + $0x82] sm:$0xff]  ;;  %v462_v1 = vmul.f32 %v2554_v10, %v1919_v4  ;;  %v3053_v10 = vld [vmem:[#allocation53_spill] sm:$0xff] }
  0x73   : > { %v791_v57 = vadd.f32 %v783_v40, %v759_v3  ;;  %v595_v61 = vadd.f32 %v587_v39, %v563_v44  ;;  %v1166_v34 = vmul.f32 %v2162_v9, %v3051_v2  ;;  %v912_v39 = vmul.f32 %v2054_v59, %v2658_v14  ;;  %v3054_v63 = vld [vmem:[#allocation63_spill] sm:$0xff] }
  0x74   : > { %v1077_v17 = vadd.f32 %v1069_v54, %v1045_v46  ;;  %v405_v3 = vadd.f32 %v397_v62, %v365_v45  ;;  %v683_v36 = vmul.f32 %v3021_v13, %v1980_v28  ;;  %v1198_v4 = vmul.f32 %v3019_v24, %v3052_v6  ;;  %v1546_v45 = vld [vmem:[%s1914_s25 + $0x90] sm:$0xff] }
  0x75   : > { %v823_v40 = vadd.f32 %v815_v41, %v791_v57  ;;  %v627_v44 = vadd.f32 %v619_v56, %v595_v61  ;;  %v494_v41 = vmul.f32 %v2563_v35, %v1932_v12  ;;  %v944_v46 = vmul.f32 %v3053_v10, %v2097_v18  ;;  %v3056_v12 = vld [vmem:[#allocation54_spill] sm:$0xff] }
  0x76   : > { %v1109_v27 = vadd.f32 %v1101_v23, %v1077_v17  ;;  %v437_v54 = vadd.f32 %v429_v37, %v405_v3  ;;  %v715_v56 = vmul.f32 %v3054_v63, %v3037_v48  ;;  %v976_v35 = vmul.f32 %v3056_v12, %v3014_v22  ;;  %v3057_v17 = vld [vmem:[#allocation27_spill] sm:$0xff]  ;;  %v1556_v3 = vld [vmem:[%s1914_s25 + $0x91] sm:$0xff] }
  0x77   : > { %v856_v47 = vadd.f32 %v848_v60, %v823_v40  ;;  %v659_v57 = vadd.f32 %v651_v15, %v627_v44  ;;  %v3055_v60 = vld [vmem:[#allocation24_spill] sm:$0xff]  ;;  %v748_v40 = vmul.f32 %v2989_v8, %v3057_v17  ;;  %v559_v63 = vmul.f32 %v1945_v19, %v1546_v45 }
  0x78   : > { %v1142_v13 = vadd.f32 %v1134_v29, %v1109_v27  ;;  %v470_v62 = vadd.f32 %v462_v1, %v437_v54  ;;  %v526_v61 = vmul.f32 %v3055_v60, %v1939_v16  ;;  %v3058_v29 = vld [vmem:[#allocation57_spill] sm:$0xff]  ;;  %v3059_v27 = vld [vmem:[#allocation31_spill] sm:$0xff]  ;;  %v3060_v17 = vld [vmem:[#allocation36_spill] sm:$0xff] }
  0x79   : > { %v888_v23 = vadd.f32 %v880_v30, %v856_v47  ;;  %v691_v37 = vadd.f32 %v683_v36, %v659_v57  ;;  %v1008_v30 = vmul.f32 %v3058_v29, %v2118_v31  ;;  %v780_v16 = vmul.f32 %v2015_v42, %v3059_v27  ;;  %v1566_v47 = vld [vmem:[%s1914_s25 + $0x92] sm:$0xff]  ;;  %v1677_v29 = vld [vmem:[%s2063_s10 + $0x80] sm:$0xff]  ;;  %s1501_s25 = sshll.u32 %s3087_s18, 3 }
  0x7a   : > { %v1174_v15 = vadd.f32 %v1166_v34, %v1142_v13  ;;  %v502_v10 = vadd.f32 %v494_v41, %v470_v62  ;;  %v591_v57 = vmul.f32 %v1956_v21, %v1556_v3  ;;  %v812_v34 = vmul.f32 %v2035_v51, %v3060_v17  ;;  %v3063_v21 = vld [vmem:[#allocation21_spill] sm:$0xff]  ;;  %v1697_v17 = vld [vmem:[%s2063_s10 + $0x82] sm:$0xff] }
  0x7b   : > { %v920_v44 = vadd.f32 %v912_v39, %v888_v23  ;;  %v723_v1 = vadd.f32 %v715_v56, %v691_v37  ;;  %v3061_v39 = vld [vmem:[#allocation10_spill] sm:$0xff]  ;;  %v623_v45 = vmul.f32 %v1965_v25, %v1566_v47  ;;  %v1073_v62 = vmul.f32 %v3063_v21, %v2140_v55  ;;  %v3065_v25 = vld [vmem:[#allocation28_spill] sm:$0xff] }
  0x7c   : > { %v1206_v54 = vadd.f32 %v1198_v4, %v1174_v15  ;;  %v534_v36 = vadd.f32 %v526_v61, %v502_v10  ;;  %v1041_v41 = vmul.f32 %v3061_v39, %v2123_v32  ;;  %v3062_v4 = vld [vmem:[#allocation40_spill] sm:$0xff]  ;;  %v719_v47 = vmul.f32 %v3047_v5, %v3037_v48 }
  0x7d   : > { %v952_v60 = vadd.f32 %v944_v46, %v920_v44  ;;  %v756_v12 = vadd.f32 %v748_v40, %v723_v1  ;;  %v845_v46 = vmul.f32 %v2040_v52, %v3062_v4  ;;  %v3064_v40 = vld [vmem:[#allocation41_spill] sm:$0xff]  ;;  %v1105_v44 = vmul.f32 %v3065_v25, %v2145_v49  ;;  %v3066_v1 = vld [vmem:[#allocation42_spill] sm:$0xff] }
  0x7e   : > { %1726 = vmatprep.mubr.msk.f32.mxu0 %vm1213_vm1, %v1206_v54  ;;  %v567_v56 = vadd.f32 %v559_v63, %v534_v36  ;;  %v877_v3 = vmul.f32 %v2045_v53, %v3064_v40  ;;  %v687_v63 = vmul.f32 %v3044_v50, %v1980_v28  ;;  %v909_v27 = vmul.f32 %v2054_v59, %v3066_v1  ;;  %v1687_v54 = vld [vmem:[%s2063_s10 + $0x81] sm:$0xff] }
  0x7f   : > { %v984_v19 = vadd.f32 %v976_v35, %v952_v60  ;;  %v788_v13 = vadd.f32 %v780_v16, %v756_v12  ;;  %v655_v35 = vmul.f32 %v3041_v0, %v1970_v26  ;;  %v1138_v26 = vmul.f32 %v2157_v38, %v1677_v29 }
  0x80   : > { %v599_v61 = vadd.f32 %v591_v57, %v567_v56  ;;  %v941_v36 = vmul.f32 %v3042_v58, %v2097_v18  ;;  %v1170_v28 = vmul.f32 %v2162_v9, %v1687_v54  ;;  %v752_v12 = vmul.f32 %v2636_v7, %v2989_v8 }
  0x81   : > { %v1016_v23 = vadd.f32 %v1008_v30, %v984_v19  ;;  %v820_v37 = vadd.f32 %v812_v34, %v788_v13  ;;  %v973_v19 = vmul.f32 %v3045_v20, %v3014_v22  ;;  %v1202_v5 = vmul.f32 %v3019_v24, %v1697_v17  ;;  %v1612_v13 = vld [vmem:[%s1950_s16 + $0x90] sm:$0xff] }
  0x82   : > { %v631_v10 = vadd.f32 %v623_v45, %v599_v61  ;;  %v784_v58 = vmul.f32 %v2645_v11, %v2015_v42  ;;  %v1005_v45 = vmul.f32 %v2538_v33, %v2118_v31  ;;  %v816_v4 = vmul.f32 %v2658_v14, %v2035_v51  ;;  %v1632_v33 = vld [vmem:[%s1950_s16 + $0x92] sm:$0xff] }
  0x83   : > { %v1049_v15 = vadd.f32 %v1041_v41, %v1016_v23  ;;  %v853_v30 = vadd.f32 %v845_v46, %v820_v37  ;;  %v1038_v20 = vmul.f32 %v2123_v32, %v3048_v43  ;;  %v1622_v23 = vld [vmem:[%s1950_s16 + $0x91] sm:$0xff]  ;;  %v1070_v11 = vmul.f32 %v2140_v55, %v3051_v2  ;;  %s1502_s16 = sshll.u32 %s3081_s19, 6 }
  0x84   : > { %v663_v0 = vadd.f32 %v655_v35, %v631_v10  ;;  %v849_v35 = vmul.f32 %v2040_v52, %v1612_v13  ;;  %v881_v40 = vmul.f32 %v2045_v53, %v1622_v23  ;;  %v1102_v14 = vmul.f32 %v2145_v49, %v3052_v6  ;;  %s340_s14 = sadd.s32 %s1502_s16, %s1501_s25 }
  0x85   : > { %v1081_v16 = vadd.f32 %v1073_v62, %v1049_v15  ;;  %v885_v60 = vadd.f32 %v877_v3, %v853_v30  ;;  %v913_v3 = vmul.f32 %v2054_v59, %v1632_v33  ;;  %v945_v2 = vmul.f32 %v3061_v39, %v2097_v18  ;;  %v3068_v30 = vld [vmem:[#allocation51_spill] sm:$0xff]  ;;  %v3069_v59 = vld [vmem:[#allocation52_spill] sm:$0xff]  ;;  %s1503_s15 = sshll.u32 %s340_s14, 3 }
  0x86   : > { %v695_v50 = vadd.f32 %v687_v63, %v663_v0  ;;  %v1167_v53 = vmul.f32 %v2162_v9, %v3068_v30  ;;  %v977_v6 = vmul.f32 %v3063_v21, %v3014_v22  ;;  %v1009_v0 = vmul.f32 %v3065_v25, %v2118_v31  ;;  %v1678_v22 = vld [vmem:[%s2063_s10 + $0x90] sm:$0xff] }
  0x87   : > { %v1113_v57 = vadd.f32 %v1105_v44, %v1081_v16  ;;  %v917_v34 = vadd.f32 %v909_v27, %v885_v60  ;;  %v3067_v44 = vld [vmem:[#allocation50_spill] sm:$0xff]  ;;  %v1199_v16 = vmul.f32 %v3019_v24, %v3069_v59  ;;  %v1139_v31 = vmul.f32 %v2157_v38, %v1678_v22  ;;  %v1698_v25 = vld [vmem:[%s2063_s10 + $0x92] sm:$0xff] }
  0x88   : > { %v727_v41 = vadd.f32 %v719_v47, %v695_v50  ;;  %v1135_v52 = vmul.f32 %v2157_v38, %v3067_v44  ;;  %v1042_v47 = vmul.f32 %v1677_v29, %v2123_v32  ;;  %v1688_v50 = vld [vmem:[%s2063_s10 + $0x91] sm:$0xff]  ;;  %s342_s10 = scalar_lea.vmem %s2801_s5, %s1503_s15 }
  0x89   : > { %v1146_v48 = vadd.f32 %v1138_v26, %v1113_v57  ;;  %v949_v56 = vadd.f32 %v941_v36, %v917_v34  ;;  %v1074_v57 = vmul.f32 %v1687_v54, %v2140_v55  ;;  %v1171_v32 = vmul.f32 %v2162_v9, %v1688_v50 }
  0x8a   : > { %v760_v7 = vadd.f32 %v752_v12, %v727_v41  ;;  %v1203_v55 = vmul.f32 %v3019_v24, %v1698_v25 }
  0x8b   : > { %v1178_v8 = vadd.f32 %v1170_v28, %v1146_v48  ;;  %v981_v46 = vadd.f32 %v973_v19, %v949_v56  ;;  %v1106_v28 = vmul.f32 %v1697_v17, %v2145_v49 }
  0x8c   : > { %v792_v61 = vadd.f32 %v784_v58, %v760_v7 }
  0x8d   : > { %v1210_v62 = vadd.f32 %v1202_v5, %v1178_v8  ;;  %v1013_v42 = vadd.f32 %v1005_v45, %v981_v46 }
  0x8e   : > { %v824_v37 = vadd.f32 %v816_v4, %v792_v61 }
  0x8f   : > { %1732 = vmatprep.mubr.msk.f32.mxu1 %vm1213_vm1, %v1210_v62  ;;  %v1046_v51 = vadd.f32 %v1038_v20, %v1013_v42 }
  0x90   : > { %v857_v43 = vadd.f32 %v849_v35, %v824_v37 }
  0x91   : > { %v1078_v15 = vadd.f32 %v1070_v11, %v1046_v51 }
  0x92   : > { %v889_v10 = vadd.f32 %v881_v40, %v857_v43 }
  0x93   : > { %v1110_v63 = vadd.f32 %v1102_v14, %v1078_v15 }
  0x94   : > { %v921_v1 = vadd.f32 %v913_v3, %v889_v10 }
  0x95   : > { %v1143_v27 = vadd.f32 %v1135_v52, %v1110_v63 }
  0x96   : > { %v953_v26 = vadd.f32 %v945_v2, %v921_v1 }
  0x97   : > { %v1175_v18 = vadd.f32 %v1167_v53, %v1143_v27 }
  0x98   : > { %v985_v39 = vadd.f32 %v977_v6, %v953_v26 }
  0x99   : > { %v1207_v60 = vadd.f32 %v1199_v16, %v1175_v18 }
  0x9a   : > { %v1017_v36 = vadd.f32 %v1009_v0, %v985_v39 }
  0x9b   : > { %1727 = vmatmul.mubr.msk.f32.gmra.mrb[2].mxu0 %vm1213_vm1, %v1207_v60 }
  0x9c   : > { %v1050_v21 = vadd.f32 %v1042_v47, %v1017_v36 }
  0x9e   : > { %v1082_v12 = vadd.f32 %v1074_v57, %v1050_v21 }
  0xa0   : > { %v1114_v34 = vadd.f32 %v1106_v28, %v1082_v12 }
  0xa2   : > { %v1147_v29 = vadd.f32 %v1139_v31, %v1114_v34 }
  0xa4   : > { %v1179_v54 = vadd.f32 %v1171_v32, %v1147_v29 }
  0xa6   : > { %v1211_v19 = vadd.f32 %v1203_v55, %v1179_v54 }
  0xa8   : > { %1733 = vmatmul.mubr.msk.f32.gmra.mrb[2].mxu1 %vm1213_vm1, %v1211_v19 }
 0x136   : > { %v1725_v38 = vpop.f32.mrb[0].mxu0 }
 0x137   : > { %1349 = vst.msk [vmem:[%s342_s10 + $0x8] sm:$0xff] %vm1347_vm2, %v1725_v38  ;;  %v1308_v49 = vpop.f32.mrb[1].mxu0 }
 0x138   : > { %1348 = vst.msk [vmem:[%s342_s10] sm:$0xff] %vm1347_vm2, %v1308_v49 }
 0x143   : > { %v1731_v9 = vpop.f32.mrb[0].mxu1 }
 0x144   : > { %1353 = vst.msk [vmem:[%s342_s10 + $0x28] sm:$0xff] %vm1347_vm2, %v1731_v9  ;;  %v1328_v24 = vpop.f32.mrb[1].mxu1 }
 0x145   : > { %1352 = vst.msk [vmem:[%s342_s10 + $0x20] sm:$0xff] %vm1347_vm2, %v1328_v24 }
 0x16e   : > { %v1728_v17 = vpop.f32.mrb[2].mxu0 }
 0x16f   : > { %1351 = vst.msk [vmem:[%s342_s10 + $0x18] sm:$0xff] %vm1347_vm2, %v1728_v17  ;;  %v1318_v48 = vpop.f32.mrb[3].mxu0 }
 0x170   : > { %1350 = vst.msk [vmem:[%s342_s10 + $0x10] sm:$0xff] %vm1347_vm2, %v1318_v48 }
 0x17b   : > { %v1734_v5 = vpop.f32.mrb[2].mxu1 }
 0x17c   : > { %1355 = vst.msk [vmem:[%s342_s10 + $0x38] sm:$0xff] %vm1347_vm2, %v1734_v5  ;;  %v1338_v41 = vpop.f32.mrb[3].mxu1 }
 0x17d   : > { %1354 = vst.msk [vmem:[%s342_s10 + $0x30] sm:$0xff] %vm1347_vm2, %v1338_v41 }
 0x17e PF: > { %s15_s22 = sadd.s32 1, %s1819_s22   ;;  %s3070_s18 = smov %s1811_s20 }
 0x17f   : > { %p12_p10 = scmp.ge.s32.totalorder %s15_s22, 18   ;;  %s3071_s19 = smov %s1815_s21 }
 0x180   : > { %s3072_s20 = smov %s3075_s23  ;;  %s3073_s21 = smov %s3079_s24 }
 0x181   :  { %14 = sbr.rel (!%p12_p10) target bundleno = 3 (0x3), region = 108 }

</bundles_post_ra>
